<compile_context>
chip_gen: v7x
topology: tpu7x:2x2x1
jax: 0.10.0
libtpu: 0.0.40
codegen_flags: <defaults>
</compile_context>

<pallas_src>
import jax
import jax.numpy as jnp
from jax import lax
from jax.experimental import pallas as pl
from jax.experimental.pallas import tpu as pltpu


# -----------------------------------------------------------------------------
# Pallas kernel: one (batch, row-tile) per grid step.
# -----------------------------------------------------------------------------
def spatial_gate_kernel(a_ref, b_ref, w1_ref, b1_ref, w2_ref, b2_ref,
                        w3a_ref, w3b_ref, b3_ref, o_ref):
    # a_ref  : (1, TH, W+6, C)   padded rows [i*TH, i*TH+TH)
    # b_ref  : (1, 6,  W+6, C)   padded rows [i*TH+TH, i*TH+TH+6)  (halo below)
    # w1_ref : (C, CE)    bf16   gate_s1 1x1 conv
    # w2_ref : (9*C, CE)  bf16   gate_s2 3x3 dilated conv, taps flattened
    # b1/b2  : (1, CE)    f32
    # w3a/w3b: (1, CE)    f32    gate_s3 1x1 conv split into out1/out2 halves
    # b3     : (1, 1)     f32
    # o_ref  : (1, TH, W, C)
    TH = a_ref.shape[1]
    Wp, C = a_ref.shape[2], a_ref.shape[3]
    W = Wp - 6

    a = a_ref[0]                                        # (TH, Wp, C)
    b = b_ref[0]                                        # (6,  Wp, C)

    # Residual pixels (kept in full precision): window rows [3, TH+3),
    # window cols [3, 3+W)  ==  the actual image pixels of this tile.
    xf = jnp.concatenate([a[3:, 3:3 + W, :], b[:3, 3:3 + W, :]],
                         axis=0).astype(jnp.float32)    # (TH, W, C)

    # bf16 window for the MXU matmuls.
    xw = jnp.concatenate([a.astype(jnp.bfloat16), b.astype(jnp.bfloat16)],
                         axis=0)                        # (TH+6, Wp, C)

    # 3 W-shifted flattened views; the kh taps are just row offsets into them.
    flat = [xw[:, 3 * kw:3 * kw + W, :].reshape((TH + 6) * W, C)
            for kw in range(3)]
    taps = [flat[kw][3 * kh * W:3 * kh * W + TH * W, :]
            for kh in range(3) for kw in range(3)]      # 9 x (TH*W, C) bf16

    # ---- gate_s1: 1x1 conv + ReLU (centre tap = unpadded pixels, bf16) ------
    centre = taps[4]                                    # (kh=1, kw=1)
    out1 = jnp.dot(centre, w1_ref[...], preferred_element_type=jnp.float32)
    out1 = jnp.maximum(out1 + b1_ref[...], 0.0)         # (TH*W, CE) f32

    # ---- gate_s2: 3x3 dilated conv fused into ONE matmul over 9C ------------
    patch = jnp.concatenate(taps, axis=-1)              # (TH*W, 9C) bf16
    out2 = jnp.dot(patch, w2_ref[...], preferred_element_type=jnp.float32)
    out2 = jnp.maximum(out2 + b2_ref[...], 0.0)         # (TH*W, CE) f32

    # ---- gate_s3 on concat([out1, out2]): VPU mul/add + ONE lane reduce -----
    s = (jnp.sum(out1 * w3a_ref[...] + out2 * w3b_ref[...],
                 axis=-1, keepdims=True)
         + b3_ref[...])                                 # (TH*W, 1)
    g = jax.nn.sigmoid(s).reshape(TH, W, 1)

    # ---- out = x * (1 + gate) -----------------------------------------------
    o_ref[0] = (xf * (g + 1.0)).astype(o_ref.dtype)


# -----------------------------------------------------------------------------
# Tile-size heuristic: rows per tile must be a multiple of 6 (so the 6-row
# bottom-halo block is block-aligned) and keep per-step VMEM modest.
# -----------------------------------------------------------------------------
def _pick_tile_rows(H, W, C, CE, budget_bytes=24 * 1024 * 1024):
    Wp = W + 6
    per_row = (2 * Wp * C * 4        # double-buffered input row block
               + 2 * W * C * 4       # double-buffered output block
               + Wp * C * (4 + 2)    # f32 residual + bf16 window
               + 3 * W * C * 2       # 3 shifted flattened views (bf16)
               + W * 9 * C * 2       # fused patch matrix (bf16)
               + 2 * W * CE * 4)     # out1 / out2 (f32)
    th = max(1, budget_bytes // max(per_row, 1))
    th = max(6, 6 * min(th // 6, 512))
    th = min(th, 6 * pl.cdiv(H, 6))  # no finer than the rounded-up height
    return int(th)


# -----------------------------------------------------------------------------
# Wrapper: NCHW in / NCHW out (PyTorch semantics).
# -----------------------------------------------------------------------------
def spatial_gate_w(x_nchw, w1, b1, w2, b2, w3, b3, *, tile_rows=None):
    N, C, H, W = x_nchw.shape
    CE = w1.shape[0]

    if tile_rows is None:
        TH = _pick_tile_rows(H, W, C, CE)
    else:
        TH = max(6, 6 * (int(tile_rows) // 6))
        TH = min(TH, 6 * pl.cdiv(H, 6))
    HT = pl.cdiv(H, TH)
    Hpad = HT * TH                                   # rows rounded up to tiles

    x = jnp.transpose(x_nchw, (0, 2, 3, 1))          # NHWC
    # Single padded copy: 3-halo each side (dilated conv padding=3) plus the
    # round-up rows so every row tile is full.
    # TODO(synk): the halo could be built purely in-kernel (masked border taps)
    # to avoid this one extra HBM pass over the activation.
    xp = jnp.pad(x, ((0, 0), (3, 3 + Hpad - H), (3, 3), (0, 0)))
    Wp = W + 6

    # Repack PyTorch OIHW weights for channel-last matmuls (bf16 MXU operands).
    w1k = jnp.transpose(w1[:, :, 0, 0], (1, 0)).astype(jnp.bfloat16)  # (C, CE)
    w2k = jnp.transpose(w2, (2, 3, 1, 0)).reshape(9 * C, CE)          # (9C, CE)
    w2k = w2k.astype(jnp.bfloat16)
    w3f = w3[0, :, 0, 0].astype(jnp.float32)
    w3a = w3f[:CE].reshape(1, CE)
    w3b = w3f[CE:].reshape(1, CE)
    b1k = b1.reshape(1, CE).astype(jnp.float32)
    b2k = b2.reshape(1, CE).astype(jnp.float32)
    b3k = b3.reshape(1, 1).astype(jnp.float32)

    out = pl.pallas_call(
        spatial_gate_kernel,
        out_shape=jax.ShapeDtypeStruct((N, Hpad, W, C), x.dtype),
        grid_spec=pltpu.PrefetchScalarGridSpec(
            num_scalar_prefetch=0,
            grid=(N, HT),
            in_specs=[
                # row block [i*TH, i*TH+TH) of the padded image ...
                pl.BlockSpec((1, TH, Wp, C), lambda n, i: (n, i, 0, 0)),
                # ... plus the next 6 rows (bottom halo).  TH % 6 == 0 makes
                # this an ordinary block-aligned spec on the *same* array.
                pl.BlockSpec((1, 6, Wp, C),
                             lambda n, i: (n, (i + 1) * (TH // 6), 0, 0)),
                pl.BlockSpec((C, CE), lambda n, i: (0, 0)),
                pl.BlockSpec((1, CE), lambda n, i: (0, 0)),
                pl.BlockSpec((9 * C, CE), lambda n, i: (0, 0)),
                pl.BlockSpec((1, CE), lambda n, i: (0, 0)),
                pl.BlockSpec((1, CE), lambda n, i: (0, 0)),
                pl.BlockSpec((1, CE), lambda n, i: (0, 0)),
                pl.BlockSpec((1, 1), lambda n, i: (0, 0)),
            ],
            out_specs=pl.BlockSpec((1, TH, W, C), lambda n, i: (n, i, 0, 0)),
        ),
        compiler_params=pltpu.CompilerParams(
            dimension_semantics=("parallel", "parallel"),
            vmem_limit_bytes=32 * 1024 * 1024),
    )(xp, xp, w1k, b1k, w2k, b2k, w3a, w3b, b3k)

    out = out[:, :H]                                  # drop round-up rows
    return jnp.transpose(out, (0, 3, 1, 2))           # back to NCHW


# -----------------------------------------------------------------------------
# Deterministic "weight-norm" parameter construction (wn = nn.utils.weight_norm,
# dim=0): w = g * v / ||v||_{dims 1,2,3}.
# -----------------------------------------------------------------------------
def weight_norm(v, g):
    norm = jnp.sqrt(jnp.sum(v * v, axis=(1, 2, 3), keepdims=True))
    return (g.reshape(-1, 1, 1, 1) / norm) * v


# Plain-JAX reference (lax convs, f32) used only to verify the kernel numerics.
def ref_forward(x, w1, b1, w2, b2, w3, b3):
    dn = ('NCHW', 'OIHW', 'NCHW')
    out1 = jax.nn.relu(
        lax.conv_general_dilated(x, w1, (1, 1), [(0, 0), (0, 0)],
                                 dimension_numbers=dn)
        + b1[None, :, None, None])
    out2 = jax.nn.relu(
        lax.conv_general_dilated(x, w2, (1, 1), [(3, 3), (3, 3)],
                                 rhs_dilation=(3, 3), dimension_numbers=dn)
        + b2[None, :, None, None])
    cat = jnp.concatenate([out1, out2], axis=1)
    s = lax.conv_general_dilated(cat, w3, (1, 1), [(0, 0), (0, 0)],
                                 dimension_numbers=dn) + b3[0]
    g = jax.nn.sigmoid(s)
    return g * x + x


if __name__ == "__main__":
    N, C, H, W = 2, 4, 16, 16
    E = 4
    CE = C * E

    key = jax.random.PRNGKey(0)
    keys = jax.random.split(key, 8)
    x = jax.random.normal(keys[0], (N, C, H, W), jnp.float32)

    v1 = jax.random.normal(keys[1], (CE, C, 1, 1), jnp.float32) * 0.3
    g1 = jax.random.uniform(keys[2], (CE,), jnp.float32, minval=0.5, maxval=1.5)
    b1 = jax.random.normal(keys[3], (CE,), jnp.float32) * 0.1

    v2 = jax.random.normal(keys[4], (CE, C, 3, 3), jnp.float32) * 0.3
    g2 = jax.random.uniform(keys[5], (CE,), jnp.float32, minval=0.5, maxval=1.5)
    b2 = jax.random.normal(keys[6], (CE,), jnp.float32) * 0.1

    v3 = jax.random.normal(keys[7], (1, 2 * CE, 1, 1), jnp.float32) * 0.3
    g3 = jnp.array([1.2], jnp.float32)
    b3 = jnp.array([0.05], jnp.float32)

    w1 = weight_norm(v1, g1)
    w2 = weight_norm(v2, g2)
    w3 = weight_norm(v3, g3)

    ref = ref_forward(x, w1, b1, w2, b2, w3, b3)

    # bf16 MXU operands (f32 accumulation) => relaxed tolerance vs the f32 ref.
    TOL = 3e-2

    # 1) force multiple row tiles per image (exercises the halo/tiling path).
    out = spatial_gate_w(x, w1, b1, w2, b2, w3, b3, tile_rows=6)
    out = jax.block_until_ready(out)
    assert out.shape == x.shape
    max_err = float(jnp.max(jnp.abs(out - ref)))
    assert max_err < TOL, max_err

    # 2) default (auto) tile size.
    out2_ = spatial_gate_w(x, w1, b1, w2, b2, w3, b3)
    out2_ = jax.block_until_ready(out2_)
    assert out2_.shape == x.shape
    max_err2 = float(jnp.max(jnp.abs(out2_ - ref)))
    assert max_err2 < TOL, max_err2

    print("KERNEL_OK")
</pallas_src>

<mosaic_0001>
module attributes {stable_mosaic.version = 11 : i64} {
  func.func @spatial_gate_kernel(%arg0: i32, %arg1: i32, %arg2: memref<1x6x22x4xf32, #tpu.memory_space<vmem>>, %arg3: memref<1x6x22x4xf32, #tpu.memory_space<vmem>>, %arg4: memref<4x16xbf16, #tpu.memory_space<vmem>>, %arg5: memref<1x16xf32, #tpu.memory_space<vmem>>, %arg6: memref<36x16xbf16, #tpu.memory_space<vmem>>, %arg7: memref<1x16xf32, #tpu.memory_space<vmem>>, %arg8: memref<1x16xf32, #tpu.memory_space<vmem>>, %arg9: memref<1x16xf32, #tpu.memory_space<vmem>>, %arg10: memref<1x1xf32, #tpu.memory_space<vmem>>, %arg11: memref<1x6x16x4xf32, #tpu.memory_space<vmem>>) attributes {dimension_semantics = [#tpu.dimension_semantics<parallel>, #tpu.dimension_semantics<parallel>], iteration_bounds = array<i64: 2, 3>, scalar_prefetch = 0 : i64, scratch_operands = 0 : i64, tpu.core_type = #tpu.core_type<tc>, window_params = [{transform_indices = @transform_0, window_bounds = array<i64: 1, 6, 22, 4>}, {transform_indices = @transform_1, window_bounds = array<i64: 1, 6, 22, 4>}, {pipeline_mode = #tpu.pipeline_mode<synchronous>, transform_indices = @transform_2, window_bounds = array<i64: 4, 16>}, {pipeline_mode = #tpu.pipeline_mode<synchronous>, transform_indices = @transform_3, window_bounds = array<i64: 1, 16>}, {pipeline_mode = #tpu.pipeline_mode<synchronous>, transform_indices = @transform_4, window_bounds = array<i64: 36, 16>}, {pipeline_mode = #tpu.pipeline_mode<synchronous>, transform_indices = @transform_5, window_bounds = array<i64: 1, 16>}, {pipeline_mode = #tpu.pipeline_mode<synchronous>, transform_indices = @transform_6, window_bounds = array<i64: 1, 16>}, {pipeline_mode = #tpu.pipeline_mode<synchronous>, transform_indices = @transform_7, window_bounds = array<i64: 1, 16>}, {pipeline_mode = #tpu.pipeline_mode<synchronous>, transform_indices = @transform_8, window_bounds = array<i64: 1, 1>}, {transform_indices = @transform_9, window_bounds = array<i64: 1, 6, 16, 4>}]} {
    %c0 = arith.constant 0 : index
    %c0_0 = arith.constant 0 : index
    %c0_1 = arith.constant 0 : index
    %c0_2 = arith.constant 0 : index
    %0 = vector.load %arg2[%c0, %c0_0, %c0_1, %c0_2] : memref<1x6x22x4xf32, #tpu.memory_space<vmem>>, vector<1x6x22x4xf32>
    %1 = vector.shape_cast %0 : vector<1x6x22x4xf32> to vector<6x22x4xf32>
    %c0_3 = arith.constant 0 : index
    %c0_4 = arith.constant 0 : index
    %c0_5 = arith.constant 0 : index
    %c0_6 = arith.constant 0 : index
    %2 = vector.load %arg3[%c0_3, %c0_4, %c0_5, %c0_6] : memref<1x6x22x4xf32, #tpu.memory_space<vmem>>, vector<1x6x22x4xf32>
    %3 = vector.shape_cast %2 : vector<1x6x22x4xf32> to vector<6x22x4xf32>
    %4 = vector.extract_strided_slice %1 {offsets = [3, 3, 0], sizes = [3, 16, 4], strides = [1, 1, 1]} : vector<6x22x4xf32> to vector<3x16x4xf32>
    %5 = vector.extract_strided_slice %3 {offsets = [0, 3, 0], sizes = [3, 16, 4], strides = [1, 1, 1]} : vector<6x22x4xf32> to vector<3x16x4xf32>
    %6 = tpu.concatenate %4, %5 in 0 : vector<3x16x4xf32>, vector<3x16x4xf32> -> vector<6x16x4xf32>
    %7 = arith.truncf %1 : vector<6x22x4xf32> to vector<6x22x4xbf16>
    %8 = arith.truncf %3 : vector<6x22x4xf32> to vector<6x22x4xbf16>
    %9 = tpu.concatenate %7, %8 in 0 : vector<6x22x4xbf16>, vector<6x22x4xbf16> -> vector<12x22x4xbf16>
    %10 = vector.extract_strided_slice %9 {offsets = [0, 0, 0], sizes = [12, 16, 4], strides = [1, 1, 1]} : vector<12x22x4xbf16> to vector<12x16x4xbf16>
    %11 = vector.shape_cast %10 : vector<12x16x4xbf16> to vector<192x4xbf16>
    %12 = vector.extract_strided_slice %9 {offsets = [0, 3, 0], sizes = [12, 16, 4], strides = [1, 1, 1]} : vector<12x22x4xbf16> to vector<12x16x4xbf16>
    %13 = vector.shape_cast %12 : vector<12x16x4xbf16> to vector<192x4xbf16>
    %14 = vector.extract_strided_slice %9 {offsets = [0, 6, 0], sizes = [12, 16, 4], strides = [1, 1, 1]} : vector<12x22x4xbf16> to vector<12x16x4xbf16>
    %15 = vector.shape_cast %14 : vector<12x16x4xbf16> to vector<192x4xbf16>
    %16 = vector.extract_strided_slice %11 {offsets = [0, 0], sizes = [96, 4], strides = [1, 1]} : vector<192x4xbf16> to vector<96x4xbf16>
    %17 = vector.extract_strided_slice %13 {offsets = [0, 0], sizes = [96, 4], strides = [1, 1]} : vector<192x4xbf16> to vector<96x4xbf16>
    %18 = vector.extract_strided_slice %15 {offsets = [0, 0], sizes = [96, 4], strides = [1, 1]} : vector<192x4xbf16> to vector<96x4xbf16>
    %19 = vector.extract_strided_slice %11 {offsets = [48, 0], sizes = [96, 4], strides = [1, 1]} : vector<192x4xbf16> to vector<96x4xbf16>
    %20 = vector.extract_strided_slice %13 {offsets = [48, 0], sizes = [96, 4], strides = [1, 1]} : vector<192x4xbf16> to vector<96x4xbf16>
    %21 = vector.extract_strided_slice %15 {offsets = [48, 0], sizes = [96, 4], strides = [1, 1]} : vector<192x4xbf16> to vector<96x4xbf16>
    %22 = vector.extract_strided_slice %11 {offsets = [96, 0], sizes = [96, 4], strides = [1, 1]} : vector<192x4xbf16> to vector<96x4xbf16>
    %23 = vector.extract_strided_slice %13 {offsets = [96, 0], sizes = [96, 4], strides = [1, 1]} : vector<192x4xbf16> to vector<96x4xbf16>
    %24 = vector.extract_strided_slice %15 {offsets = [96, 0], sizes = [96, 4], strides = [1, 1]} : vector<192x4xbf16> to vector<96x4xbf16>
    %c0_7 = arith.constant 0 : index
    %c0_8 = arith.constant 0 : index
    %25 = vector.load %arg4[%c0_7, %c0_8] : memref<4x16xbf16, #tpu.memory_space<vmem>>, vector<4x16xbf16>
    %cst = arith.constant dense<0.000000e+00> : vector<96x16xf32>
    %26 = tpu.matmul %20, %25, %cst {dimension_numbers = #tpu.dot_dimension_numbers<[1], [0], [0], [1], [0, 0, 1, 1], [], []>} : vector<96x4xbf16>, vector<4x16xbf16>, vector<96x16xf32> -> vector<96x16xf32>
    %c0_9 = arith.constant 0 : index
    %c0_10 = arith.constant 0 : index
    %27 = vector.load %arg5[%c0_9, %c0_10] : memref<1x16xf32, #tpu.memory_space<vmem>>, vector<1x16xf32>
    %28 = vector.broadcast %27 : vector<1x16xf32> to vector<96x16xf32>
    %29 = arith.addf %26, %28 : vector<96x16xf32>
    %cst_11 = arith.constant 0.000000e+00 : f32
    %30 = vector.broadcast %cst_11 : f32 to vector<96x16xf32>
    %31 = arith.maximumf %29, %30 : vector<96x16xf32>
    %32 = tpu.concatenate %16, %17, %18, %19, %20, %21, %22, %23, %24 in 1 : vector<96x4xbf16>, vector<96x4xbf16>, vector<96x4xbf16>, vector<96x4xbf16>, vector<96x4xbf16>, vector<96x4xbf16>, vector<96x4xbf16>, vector<96x4xbf16>, vector<96x4xbf16> -> vector<96x36xbf16>
    %c0_12 = arith.constant 0 : index
    %c0_13 = arith.constant 0 : index
    %33 = vector.load %arg6[%c0_12, %c0_13] : memref<36x16xbf16, #tpu.memory_space<vmem>>, vector<36x16xbf16>
    %cst_14 = arith.constant dense<0.000000e+00> : vector<96x16xf32>
    %34 = tpu.matmul %32, %33, %cst_14 {dimension_numbers = #tpu.dot_dimension_numbers<[1], [0], [0], [1], [0, 0, 1, 1], [], []>} : vector<96x36xbf16>, vector<36x16xbf16>, vector<96x16xf32> -> vector<96x16xf32>
    %c0_15 = arith.constant 0 : index
    %c0_16 = arith.constant 0 : index
    %35 = vector.load %arg7[%c0_15, %c0_16] : memref<1x16xf32, #tpu.memory_space<vmem>>, vector<1x16xf32>
    %36 = vector.broadcast %35 : vector<1x16xf32> to vector<96x16xf32>
    %37 = arith.addf %34, %36 : vector<96x16xf32>
    %cst_17 = arith.constant 0.000000e+00 : f32
    %38 = vector.broadcast %cst_17 : f32 to vector<96x16xf32>
    %39 = arith.maximumf %37, %38 : vector<96x16xf32>
    %c0_18 = arith.constant 0 : index
    %c0_19 = arith.constant 0 : index
    %40 = vector.load %arg8[%c0_18, %c0_19] : memref<1x16xf32, #tpu.memory_space<vmem>>, vector<1x16xf32>
    %41 = vector.broadcast %40 : vector<1x16xf32> to vector<96x16xf32>
    %42 = arith.mulf %31, %41 : vector<96x16xf32>
    %c0_20 = arith.constant 0 : index
    %c0_21 = arith.constant 0 : index
    %43 = vector.load %arg9[%c0_20, %c0_21] : memref<1x16xf32, #tpu.memory_space<vmem>>, vector<1x16xf32>
    %44 = vector.broadcast %43 : vector<1x16xf32> to vector<96x16xf32>
    %45 = arith.mulf %39, %44 : vector<96x16xf32>
    %46 = arith.addf %42, %45 : vector<96x16xf32>
    %cst_22 = arith.constant dense<0.000000e+00> : vector<96xf32>
    %47 = vector.multi_reduction <add>, %46, %cst_22 [1] : vector<96x16xf32> to vector<96xf32>
    %48 = vector.shape_cast %47 : vector<96xf32> to vector<96x1xf32>
    %c0_23 = arith.constant 0 : index
    %c0_24 = arith.constant 0 : index
    %49 = vector.load %arg10[%c0_23, %c0_24] : memref<1x1xf32, #tpu.memory_space<vmem>>, vector<1x1xf32>
    %50 = vector.broadcast %49 : vector<1x1xf32> to vector<96x1xf32>
    %51 = arith.addf %48, %50 : vector<96x1xf32>
    %52 = arith.negf %51 : vector<96x1xf32>
    %53 = math.exp %52 : vector<96x1xf32>
    %cst_25 = arith.constant 1.000000e+00 : f32
    %54 = vector.broadcast %cst_25 : f32 to vector<96x1xf32>
    %55 = arith.addf %54, %53 : vector<96x1xf32>
    %56 = arith.divf %54, %55 : vector<96x1xf32>
    %57 = vector.shape_cast %56 : vector<96x1xf32> to vector<6x16x1xf32>
    %cst_26 = arith.constant 1.000000e+00 : f32
    %58 = vector.broadcast %cst_26 : f32 to vector<6x16x1xf32>
    %59 = arith.addf %57, %58 : vector<6x16x1xf32>
    %60 = vector.broadcast %59 : vector<6x16x1xf32> to vector<6x16x4xf32>
    %61 = arith.mulf %6, %60 : vector<6x16x4xf32>
    %c0_27 = arith.constant 0 : index
    %c0_28 = arith.constant 0 : index
    %c0_29 = arith.constant 0 : index
    %c0_30 = arith.constant 0 : index
    %62 = vector.load %arg11[%c0_27, %c0_28, %c0_29, %c0_30] : memref<1x6x16x4xf32, #tpu.memory_space<vmem>>, vector<1x6x16x4xf32>
    %63 = vector.shape_cast %62 : vector<1x6x16x4xf32> to vector<6x16x4xf32>
    %64 = vector.shape_cast %61 : vector<6x16x4xf32> to vector<1x6x16x4xf32>
    tpu.vector_store %arg11[%c0_27, %c0_28, %c0_29, %c0_30], %64 {strides = array<i32>} : memref<1x6x16x4xf32, #tpu.memory_space<vmem>>, vector<1x6x16x4xf32>,
    return
  }
  func.func @transform_0(%arg0: i32, %arg1: i32) -> (i32, i32, i32, i32) {
    %c0_i32 = arith.constant 0 : i32
    %c0_i32_0 = arith.constant 0 : i32
    %c0_i32_1 = arith.constant 0 : i32
    return %arg0, %arg1, %c0_i32, %c0_i32_0 : i32, i32, i32, i32
  }
  func.func @transform_1(%arg0: i32, %arg1: i32) -> (i32, i32, i32, i32) {
    %c1_i32 = arith.constant 1 : i32
    %0 = arith.addi %arg1, %c1_i32 : i32
    %c1_i32_0 = arith.constant 1 : i32
    %1 = arith.muli %0, %c1_i32_0 : i32
    %c0_i32 = arith.constant 0 : i32
    %c0_i32_1 = arith.constant 0 : i32
    %c0_i32_2 = arith.constant 0 : i32
    return %arg0, %1, %c0_i32, %c0_i32_1 : i32, i32, i32, i32
  }
  func.func @transform_2(%arg0: i32, %arg1: i32) -> (i32, i32) {
    %c0_i32 = arith.constant 0 : i32
    %c0_i32_0 = arith.constant 0 : i32
    %c0_i32_1 = arith.constant 0 : i32
    return %c0_i32, %c0_i32_0 : i32, i32
  }
  func.func @transform_3(%arg0: i32, %arg1: i32) -> (i32, i32) {
    %c0_i32 = arith.constant 0 : i32
    %c0_i32_0 = arith.constant 0 : i32
    %c0_i32_1 = arith.constant 0 : i32
    return %c0_i32, %c0_i32_0 : i32, i32
  }
  func.func @transform_4(%arg0: i32, %arg1: i32) -> (i32, i32) {
    %c0_i32 = arith.constant 0 : i32
    %c0_i32_0 = arith.constant 0 : i32
    %c0_i32_1 = arith.constant 0 : i32
    return %c0_i32, %c0_i32_0 : i32, i32
  }
  func.func @transform_5(%arg0: i32, %arg1: i32) -> (i32, i32) {
    %c0_i32 = arith.constant 0 : i32
    %c0_i32_0 = arith.constant 0 : i32
    %c0_i32_1 = arith.constant 0 : i32
    return %c0_i32, %c0_i32_0 : i32, i32
  }
  func.func @transform_6(%arg0: i32, %arg1: i32) -> (i32, i32) {
    %c0_i32 = arith.constant 0 : i32
    %c0_i32_0 = arith.constant 0 : i32
    %c0_i32_1 = arith.constant 0 : i32
    return %c0_i32, %c0_i32_0 : i32, i32
  }
  func.func @transform_7(%arg0: i32, %arg1: i32) -> (i32, i32) {
    %c0_i32 = arith.constant 0 : i32
    %c0_i32_0 = arith.constant 0 : i32
    %c0_i32_1 = arith.constant 0 : i32
    return %c0_i32, %c0_i32_0 : i32, i32
  }
  func.func @transform_8(%arg0: i32, %arg1: i32) -> (i32, i32) {
    %c0_i32 = arith.constant 0 : i32
    %c0_i32_0 = arith.constant 0 : i32
    %c0_i32_1 = arith.constant 0 : i32
    return %c0_i32, %c0_i32_0 : i32, i32
  }
  func.func @transform_9(%arg0: i32, %arg1: i32) -> (i32, i32, i32, i32) {
    %c0_i32 = arith.constant 0 : i32
    %c0_i32_0 = arith.constant 0 : i32
    %c0_i32_1 = arith.constant 0 : i32
    return %arg0, %arg1, %c0_i32, %c0_i32_0 : i32, i32, i32, i32
  }
}

</mosaic_0001>

<bundles_post_ra>
// kernel: tpu_custom_call.1
= control target key start
LH: loop header
LB: loop body
LE: loop exit
PB: predicated region body
PF: predicated region fallthrough
CT: control target
= control target key end

     0   :  { %s1962_s11 = smov 0   ;;  %s1964_s12 = smov 0   ;;  %s2535_s0 = inlined_call_operand.vmem [shape: f32[2,24,22,4], index: 0, kind: input, shape index: {}]   ;;  %s2536_s1 = inlined_call_operand.vmem [shape: f32[2,24,22,4], index: 1, kind: input, shape index: {}]   ;;  %s2537_s2 = inlined_call_operand.vmem [shape: bf16[4,16], index: 2, kind: input, shape index: {}]   ;;  %s2538_s3 = inlined_call_operand.vmem [shape: f32[1,16], index: 3, kind: input, shape index: {}]   ;;  %s2539_s4 = inlined_call_operand.vmem [shape: bf16[36,16], index: 4, kind: input, shape index: {}]   ;;  %s2540_s5 = inlined_call_operand.vmem [shape: f32[1,16], index: 5, kind: input, shape index: {}]   ;;  %s2541_s6 = inlined_call_operand.vmem [shape: f32[1,16], index: 6, kind: input, shape index: {}]   ;;  %s2542_s7 = inlined_call_operand.vmem [shape: f32[1,16], index: 7, kind: input, shape index: {}]   ;;  %s2543_s8 = inlined_call_operand.<no memory space> [shape: f32[1,1], index: 8, kind: input, shape index: {}]   ;;  %s2544_s9 = inlined_call_operand.vmem [shape: f32[2,18,16,4], index: 9, kind: output, shape index: {}]  }
   0x1   :  { %v14_v0 = vstv %s2543_s8  ;;  %s1966_s13 = smov 0   ;;  %s1968_s14 = smov 0  }
   0x2   :  { %15 = vst [vmem:[#allocation2] sm:$0x1] %v14_v0  ;;  %s1970_s15 = smov 0  }
   0x3 LB: > { %s30_s8 = sadd.s32 1, %s1890_s13  ;;  %s33_s16 = sadd.s32 1, %s1894_s14  ;;  %s1898_s15 = sphi %s1970_s15, %s21_s15   ;;  %s1894_s14 = sphi %s1968_s14, %s2548_s14   ;;  %s1890_s13 = sphi %s1966_s13, %s2547_s13   ;;  %s1886_s12 = sphi %s1964_s12, %s2546_s12   ;;  %s1882_s11 = sphi %s1962_s11, %s2545_s11  }
   0x4   : > { %p31_p0 = scmp.ge.s32.totalorder %s30_s8, 3  ;;  %p1647_p1 = scmp.ge.s32.totalorder %s1898_s15, 1 }
   0x5   : > { %p333_p2 = scmp.lt.s32.totalorder %s1898_s15, 7 }
   0x6   : > { %s2550_s8 = smov (%p31_p0, %s30_s8), 0  ;;  %s2552_s16 = smov (!%p31_p0, %s33_s16), %s1894_s14 }
   0x7   : > { %p334_p3 = pnand %p1647_p1, %p333_p2  ;;  %p35_p4 = scmp.ge.s32.totalorder %s2552_s16, 2 }
   0x8   : > { %s1992_s17 = smul.u32 (!%p334_p3), 6, %s1882_s11  ;;  %p391_p5 = scmp.lt.s32.totalorder (!%p334_p3), %s1886_s12, 1  ;;  %vm715_vm0 = vcmask (!%p334_p3), 1044480   ;;  %vm486_vm1 = vsmask.f32 (!%p334_p3), 6400  ;;  %vm760_vm2 = vcmask (!%p334_p3), 31744  }
   0x9   : > { %s2554_s16 = smov (%p35_p4, %s2552_s16), 0  ;;  %337 = sbr.rel (%p334_p3) target bundleno = 775 (0x307), region = 56 }
   0xa   : > { %s401_s18 = sadd.s32 (!%p334_p3), 1, %s1882_s11  ;;  %p393_p6 = scmp.lt.s32.totalorder (!%p334_p3), %s1992_s17, 23  ;;  %vm779_vm3 = vcmask (!%p334_p3), 1041408   ;;  %vm984_vm4 = vcmask (!%p334_p3), 64512   ;;  %vm997_vm5 = vcmask (!%p334_p3), 97280   ;;  %vm1010_vm6 = vcmask (!%p334_p3), 130048  }
   0xb   : > { %s402_s19 = smul.u32 (!%p334_p3), 6, %s401_s18  ;;  %s1904_s27 = smov (!%p334_p3), 4   ;;  %vm1023_vm7 = vcmask (!%p334_p3), 162816   ;;  %vm1036_vm8 = vcmask (!%p334_p3), 195584   ;;  %vm1049_vm9 = vcmask (!%p334_p3), 228352   ;;  %vm1062_vm10 = vcmask (!%p334_p3), 261120  }
   0xc   : > { %s1907_s10 = smov (!%p334_p3), 32   ;;  %vm1102_vm11 = vcmask (!%p334_p3), 293888   ;;  %p417_p8 = scmp.lt.s32.totalorder (!%p334_p3), %s1992_s17, 17  ;;  %vm1503_vm12 = vcmask (!%p334_p3), 31747   ;;  %vm1448_vm13 = vcmask (!%p334_p3), 1042432   ;;  %vm1506_vm14 = vcmask (!%p334_p3), 26624  }
   0xd   : > { %p405_p7 = scmp.lt.s32.totalorder (!%p334_p3), %s402_s19, 23 }
  0x10   : > { %s2556_s12 = smov (!%p391_p5, %s1886_s12), 1  ;;  %s2558_s19 = smov (!%p405_p7, %s402_s19), 23 }
  0x11   : > { %s1737_s20 = smul.u32 72, %s2556_s12 }
  0x12   : > { %s394_s21 = scalar_select %p393_p6, %s1992_s17, 23 }
  0x13   : > { %s1738_s25 = smul.u32 3, %s2558_s19  ;;  %s1900_s19 = smov 12  }
  0x14   : > { %s1736_s22 = smul.u32 3, %s394_s21  ;;  %s1902_s21 = smov 8  }
  0x15   : > { %s409_s29 = sadd.s32 %s1738_s25, %s1737_s20  ;;  %s2560_s17 = smov (!%p417_p8, %s1992_s17), 17 }
  0x16   : > { %s397_s23 = sadd.s32 %s1737_s20, %s1736_s22  ;;  %s1649_s30 = sshll.u32 %s409_s29, 3 }
  0x17   : > { %s1648_s24 = sshll.u32 %s397_s23, 3  ;;  %s2017_s18 = scalar_lea.vmem %s2536_s1, %s1649_s30 }
  0x18   : > { %s2002_s28 = scalar_lea.vmem %s2535_s0, %s1648_s24  ;;  %v447_v13 = vld [vmem:[%s2017_s18 + $0x18] sm:$0xff]  ;;  %v448_v14 = vld [vmem:[%s2017_s18 + $0x20] sm:$0xff]  ;;  %v445_v21 = vld [vmem:[%s2017_s18 + $0x8] sm:$0xff]  ;;  %s1901_s20 = smov 24  }
  0x19   : > { %v438_v1 = vld [vmem:[%s2002_s28 + $0x60] sm:$0xff]  ;;  %v439_v2 = vld [vmem:[%s2002_s28 + $0x68] sm:$0xff]  ;;  %v436_v5 = vld [vmem:[%s2002_s28 + $0x50] sm:$0xff]  ;;  %v2035_v20 = vpack.c.bf16 %v448_v14, %v447_v13  ;;  %s1903_s22 = smov 20   ;;  %s1905_s29 = smov 16  }
  0x1a   : > { %v435_v3 = vld [vmem:[%s2002_s28 + $0x48] sm:$0xff]  ;;  %v2007_v4 = vpack.c.bf16 %v439_v2, %v438_v1  ;;  %v437_v6 = vld [vmem:[%s2002_s28 + $0x58] sm:$0x3f]  ;;  %v426_v7 = vld [vmem:[%s2002_s28] sm:$0xff]  ;;  %s1906_s30 = smov 28   ;;  %s1650_s11 = sshll.u32 %s2560_s17, 1 }
  0x1b   : > { %v2012_v8 = vpack.c.bf16 %v436_v5, %v435_v3  ;;  %v2019_v9 = vpack.c.bf16 %v437_v6, %v437_v6  ;;  %v427_v10 = vld [vmem:[%s2002_s28 + $0x8] sm:$0xff]  ;;  %v428_v11 = vld [vmem:[%s2002_s28 + $0x10] sm:$0x3f]  ;;  %v429_v12 = vld [vmem:[%s2002_s28 + $0x18] sm:$0xff] }
  0x1c   : > { %902 = vrot.lane.b32.xlu1 %v2007_v4, %s1900_s19  ;;  %v444_v15 = vld [vmem:[%s2017_s18] sm:$0xff]  ;;  %v2029_v16 = vpack.c.bf16 %v427_v10, %v426_v7  ;;  %v463_v17 = vpack.c.bf16 %v428_v11, %v428_v11  ;;  %v728_v18 = vrot.slane %v2007_v4, 3  ;;  %v556_v19 = vshrl.u32 %v2007_v4, 16  ;;  %v431_v25 = vld [vmem:[%s2002_s28 + $0x28] sm:$0x3f] }
  0x1d   : > { %900 = vrot.lane.b32.xlu0 %v2012_v8, %s1900_s19  ;;  %v725_v22 = vrot.slane %v2012_v8, 3  ;;  %v726_v23 = vrot.slane %v2019_v9, 3  ;;  %v430_v24 = vld [vmem:[%s2002_s28 + $0x20] sm:$0xff]  ;;  %v2042_v26 = vpack.c.bf16 %v445_v21, %v444_v15  ;;  %v440_v30 = vld [vmem:[%s2002_s28 + $0x70] sm:$0x3f]  ;;  %v465_v32 = vpack.c.bf16 %v431_v25, %v431_v25 }
  0x1e   : > { %v716_v27 = vrot.slane %v2029_v16, 3  ;;  %v717_v28 = vrot.slane %v463_v17, 3  ;;  %v2045_v29 = vpack.c.bf16 %v430_v24, %v429_v12  ;;  %v488_v33 = vshrl.u32 %v2029_v16, 16  ;;  %v449_v63 = vld [vmem:[%s2017_s18 + $0x28] sm:$0x3f]  ;;  %v1791_v5 = vld [vmem:[%s2539_s4] sm:$0xff]  }
  0x1f   : > { %v2049_v31 = vsel %vm715_vm0, %v725_v22, %v726_v23  ;;  %v491_v34 = vshll.u32 %v2029_v16, 16  ;;  %v496_v37 = vshrl.u32 %v463_v17, 16  ;;  %v499_v38 = vshll.u32 %v463_v17, 16  ;;  %v1792_v12 = vld [vmem:[%s2539_s4 + $0x8] sm:$0xff]   ;;  %1716 = vmatprep.subr.bf16.mxu1 %v1791_v5 }
  0x20   : > { %938 = vrot.lane.b32.xlu1 %v2035_v20, %s1901_s20  ;;  %v718_v35 = vsel %vm715_vm0, %v716_v27, %v717_v28  ;;  %v719_v36 = vrot.slane %v2045_v29, 3  ;;  %v720_v39 = vrot.slane %v465_v32, 3  ;;  %v490_v40 = vrot.slane %v488_v33, 1  ;;  %1717 = vmatpush3.bf16.msra.mxu1 %v1791_v5 }
  0x21   : > { %936 = vrot.lane.b32.xlu0 %v2042_v26, %s1901_s20  ;;  %v493_v41 = vrot.slane %v491_v34, 2  ;;  %v471_v42 = vpack.c.bf16 %v440_v30, %v440_v30  ;;  %v498_v43 = vrot.slane %v496_v37, 1  ;;  %v501_v44 = vrot.slane %v499_v38, 2  ;;  %1718 = vmatprep.subr.bf16.mxu1 %v1792_v12  ;;  %v432_v34 = vld [vmem:[%s2002_s28 + $0x30] sm:$0xff] }
  0x22   : > { %v505_v45 = vshrl.u32 %v2045_v29, 16  ;;  %v508_v46 = vshll.u32 %v2045_v29, 16  ;;  %v721_v47 = vsel %vm715_vm0, %v719_v36, %v720_v39  ;;  %v513_v50 = vshrl.u32 %v465_v32, 16  ;;  %v433_v39 = vld [vmem:[%s2002_s28 + $0x38] sm:$0xff] }
  0x23   : > { %v494_v48 = vor.u32 %v493_v41, %v490_v40  ;;  %v729_v49 = vrot.slane %v471_v42, 3  ;;  %v502_v51 = vor.u32 %v501_v44, %v498_v43  ;;  %v516_v54 = vshll.u32 %v465_v32, 16  ;;  %v434_v40 = vld [vmem:[%s2002_s28 + $0x40] sm:$0x3f] }
  0x24   : > { %888 = vrot.lane.b32.xlu1 %v718_v35, %s1902_s21  ;;  %v507_v52 = vrot.slane %v505_v45, 1  ;;  %v510_v53 = vrot.slane %v508_v46, 2  ;;  %v515_v56 = vrot.slane %v513_v50, 1  ;;  %v558_v57 = vrot.slane %v556_v19, 1  ;;  %1719 = vmatpush3.bf16.msra.mxu1 %v1792_v12 }
  0x25   : > { %924 = vrot.lane.b32.xlu0 %v2049_v31, %s1903_s22  ;;  %v2066_v55 = vsel %vm715_vm0, %v728_v18, %v729_v49  ;;  %v559_v58 = vshll.u32 %v2007_v4, 16  ;;  %v503_v59 = vsel %vm486_vm1, %v494_v48, %v502_v51  ;;  %v518_v61 = vrot.slane %v516_v54, 2  ;;  %v446_v18 = vld [vmem:[%s2017_s18 + $0x10] sm:$0x3f] }
  0x26   : > { %v511_v60 = vor.u32 %v510_v53, %v507_v52  ;;  %v564_v62 = vshrl.u32 %v471_v42, 16  ;;  %v567_v1 = vshll.u32 %v471_v42, 16  ;;  %v539_v2 = vshrl.u32 %v2012_v8, 16 }
  0x27   : > { %v561_v0 = vrot.slane %v559_v58, 2  ;;  %v542_v3 = vshll.u32 %v2012_v8, 16  ;;  %v519_v6 = vor.u32 %v518_v61, %v515_v56  ;;  %v547_v10 = vshrl.u32 %v2019_v9, 16 }
  0x28   : > { %890 = vrot.lane.b32.xlu1 %v721_v47, %s1902_s21  ;;  %v566_v7 = vrot.slane %v564_v62, 1  ;;  %v550_v11 = vshll.u32 %v2019_v9, 16  ;;  %v569_v14 = vrot.slane %v567_v1, 2  ;;  %v541_v15 = vrot.slane %v539_v2, 1  ;;  %v441_v1 = vld [vmem:[%s2002_s28 + $0x78] sm:$0xff]  ;;  %v442_v2 = vld [vmem:[%s2002_s28 + $0x80] sm:$0xff] }
  0x29   : > { %876 = vrot.lane.b32.xlu0 %v503_v59, %s1904_s27  ;;  %v562_v13 = vor.u32 %v561_v0, %v558_v57  ;;  %v544_v17 = vrot.slane %v542_v3, 2  ;;  %v520_v19 = vsel %vm486_vm1, %v511_v60, %v519_v6  ;;  %v549_v21 = vrot.slane %v547_v10, 1  ;;  %v443_v6 = vld [vmem:[%s2002_s28 + $0x88] sm:$0x3f] }
  0x2a   : > { %v552_v22 = vrot.slane %v550_v11, 2  ;;  %v2085_v23 = vpack.c.bf16 %v449_v63, %v449_v63  ;;  %v570_v9 = vor.u32 %v569_v14, %v566_v7  ;;  %v607_v25 = vshrl.u32 %v2035_v20, 16 }
  0x2b   : > { %v545_v24 = vor.u32 %v544_v17, %v541_v15  ;;  %v610_v27 = vshll.u32 %v2035_v20, 16  ;;  %v475_v33 = vpack.c.bf16 %v446_v18, %v446_v18  ;;  %v590_v38 = vshrl.u32 %v2042_v26, 16  ;;  %v453_v17 = vld [vmem:[%s2017_s18 + $0x48] sm:$0xff]  ;;  %v454_v18 = vld [vmem:[%s2017_s18 + $0x50] sm:$0xff] }
  0x2c   : > { %926 = vrot.lane.b32.xlu1 %v2066_v55, %s1903_s22  ;;  %v553_v28 = vor.u32 %v552_v22, %v549_v21  ;;  %v615_v30 = vshrl.u32 %v2085_v23, 16  ;;  %v618_v32 = vshll.u32 %v2085_v23, 16  ;;  %v2096_v35 = vsel %vm486_vm1, %v562_v13, %v570_v9  ;;  %v455_v9 = vld [vmem:[%s2017_s18 + $0x58] sm:$0x3f] }
  0x2d   : > { %878 = vrot.lane.b32.xlu0 %v520_v19, %s1904_s27  ;;  %v609_v36 = vrot.slane %v607_v25, 1  ;;  %v612_v37 = vrot.slane %v610_v27, 2  ;;  %v593_v44 = vshll.u32 %v2042_v26, 16  ;;  %v592_v46 = vrot.slane %v590_v38, 1 }
  0x2e   : > { %v2102_v41 = vsel %vm486_vm1, %v545_v24, %v553_v28  ;;  %v617_v42 = vrot.slane %v615_v30, 1  ;;  %v620_v43 = vrot.slane %v618_v32, 2  ;;  %v598_v47 = vshrl.u32 %v475_v33, 16  ;;  %v450_v28 = vld [vmem:[%s2017_s18 + $0x30] sm:$0xff]  ;;  %v451_v30 = vld [vmem:[%s2017_s18 + $0x38] sm:$0xff] }
  0x2f   : > { %v613_v45 = vor.u32 %v612_v37, %v609_v36  ;;  %v601_v48 = vshll.u32 %v475_v33, 16  ;;  %1704 = vmatprep.mubr.msk.bf16.mxu0 %vm760_vm2, %v2102_v41  ;;  %v595_v50 = vrot.slane %v593_v44, 2  ;;  %v2109_v51 = vpack.c.bf16 %v433_v39, %v432_v34 }
  0x30   : > { %914 = vrot.lane.b32.xlu1 %v2096_v35, %s1905_s29  ;;  %v621_v49 = vor.u32 %v620_v43, %v617_v42  ;;  %v2111_v52 = vpack.c.bf16 %v434_v40, %v434_v40  ;;  %v600_v53 = vrot.slane %v598_v47, 1  ;;  %v734_v56 = vrot.slane %v2042_v26, 3 }
  0x31   : > { %912 = vrot.lane.b32.xlu0 %v2102_v41, %s1905_s29  ;;  %v603_v54 = vrot.slane %v601_v48, 2  ;;  %v596_v58 = vor.u32 %v595_v50, %v592_v46  ;;  %v522_v59 = vshrl.u32 %v2109_v51, 16  ;;  %v525_v60 = vshll.u32 %v2109_v51, 16 }
  0x32   : > { %v2117_v57 = vsel %vm486_vm1, %v613_v45, %v621_v49  ;;  %v530_v62 = vshrl.u32 %v2111_v52, 16  ;;  %v533_v63 = vshll.u32 %v2111_v52, 16  ;;  %v735_v0 = vrot.slane %v475_v33, 3  ;;  %v452_v49 = vld [vmem:[%s2017_s18 + $0x40] sm:$0x3f] }
  0x33   : > { %v604_v61 = vor.u32 %v603_v54, %v600_v53  ;;  %v524_v3 = vrot.slane %v522_v59, 1  ;;  %v527_v5 = vrot.slane %v525_v60, 2  ;;  %v737_v13 = vrot.slane %v2035_v20, 3 }
  0x34   : > { %950 = vrot.lane.b32.xlu1 %v2117_v57, %s1906_s30  ;;  %v532_v10 = vrot.slane %v530_v62, 1  ;;  %v535_v11 = vrot.slane %v533_v63, 2  ;;  %v738_v14 = vrot.slane %v2085_v23, 3  ;;  %v2135_v15 = vpack.c.bf16 %v442_v2, %v441_v1  ;;  %v456_v62 = vld [vmem:[%s2017_s18 + $0x60] sm:$0xff]  ;;  %v461_v63 = vld [vmem:[%s2017_s18 + $0x88] sm:$0x3f] }
  0x35   : > { %v2129_v7 = vsel %vm486_vm1, %v596_v58, %v604_v61  ;;  %v528_v12 = vor.u32 %v527_v5, %v524_v3  ;;  %v2140_v21 = vsel %vm715_vm0, %v734_v56, %v735_v0  ;;  %v473_v22 = vpack.c.bf16 %v443_v6, %v443_v6  ;;  %v459_v56 = vld [vmem:[%s2017_s18 + $0x78] sm:$0xff]  ;;  %v460_v58 = vld [vmem:[%s2017_s18 + $0x80] sm:$0xff]  ;;  %v458_v5 = vld [vmem:[%s2017_s18 + $0x70] sm:$0x3f] }
  0x36   : > { %948 = vrot.lane.b32.xlu0 %v2129_v7, %s1906_s30  ;;  %v536_v19 = vor.u32 %v535_v11, %v532_v10  ;;  %v722_v24 = vrot.slane %v2109_v51, 3  ;;  %v573_v25 = vshrl.u32 %v2135_v15, 16  ;;  %v576_v27 = vshll.u32 %v2135_v15, 16 }
  0x37   : > { %v581_v32 = vshrl.u32 %v473_v22, 16  ;;  %v584_v33 = vshll.u32 %v473_v22, 16  ;;  %v2149_v34 = vpack.c.bf16 %v454_v18, %v453_v17  ;;  %v2155_v36 = vsel %vm715_vm0, %v737_v13, %v738_v14 }
  0x38   : > { %v537_v23 = vsel %vm486_vm1, %v528_v12, %v536_v19  ;;  %v575_v37 = vrot.slane %v573_v25, 1  ;;  %v578_v38 = vrot.slane %v576_v27, 2  ;;  %v2157_v39 = vpack.c.bf16 %v455_v9, %v455_v9 }
  0x39   : > { %880 = vrot.lane.b32.xlu1 %v537_v23, %s1904_s27  ;;  %v723_v40 = vrot.slane %v2111_v52, 3  ;;  %v583_v42 = vrot.slane %v581_v32, 1  ;;  %v586_v43 = vrot.slane %v584_v33, 2  ;;  %v2160_v44 = vpack.c.bf16 %v451_v30, %v450_v28 }
  0x3a   : > { %960 = vrot.lane.b32.xlu0 %v2140_v21, %s1907_s10  ;;  %v731_v45 = vrot.slane %v2135_v15, 3  ;;  %v732_v46 = vrot.slane %v473_v22, 3  ;;  %v641_v47 = vshrl.u32 %v2149_v34, 16  ;;  %v644_v48 = vshll.u32 %v2149_v34, 16 }
  0x3b   : > { %v579_v50 = vor.u32 %v578_v38, %v575_v37  ;;  %v587_v52 = vor.u32 %v586_v43, %v583_v42  ;;  %v649_v53 = vshrl.u32 %v2157_v39, 16  ;;  %v652_v54 = vshll.u32 %v2157_v39, 16 }
  0x3c   : > { %v724_v59 = vsel %vm715_vm0, %v722_v24, %v723_v40  ;;  %v624_v60 = vshrl.u32 %v2160_v44, 16  ;;  %v2176_v61 = vpack.c.bf16 %v452_v49, %v452_v49  ;;  %v2182_v0 = vsel %vm715_vm0, %v731_v45, %v732_v46 }
  0x3d   : > { %882 = vrot.lane.b32.xlu1 %v2102_v41, %s1904_s27  ;;  %v457_v41 = vld [vmem:[%s2017_s18 + $0x68] sm:$0xff]  ;;  %v2184_v1 = vrot.slane %v641_v47, 1  ;;  %v2186_v2 = vrot.slane %v644_v48, 2  ;;  %v2188_v3 = vpack.c.bf16 %v460_v58, %v459_v56  ;;  %v2195_v6 = vsel %vm486_vm1, %v579_v50, %v587_v52  ;;  %v1793_v52 = vld [vmem:[%s2539_s4 + $0x10] ss:$0 sps:$4 sm:$0x33]  }
  0x3e   : > { %962 = vrot.lane.b32.xlu0 %v2155_v36, %s1907_s10  ;;  %v2197_v10 = vrot.slane %v649_v53, 1  ;;  %v654_v11 = vrot.slane %v652_v54, 2  ;;  %v627_v12 = vshll.u32 %v2160_v44, 16  ;;  %v626_v13 = vrot.slane %v624_v60, 1  ;;  %1735 = vmatprep.subr.msk.bf16.mxu1 %vm779_vm3, %v1793_v52 }
  0x3f   : > { %v2200_v14 = vpack.c.bf16 %v457_v41, %v456_v62  ;;  %v485_v17 = vpack.c.bf16 %v461_v63, %v461_v63  ;;  %v675_v18 = vshrl.u32 %v2188_v3, 16  ;;  %v632_v19 = vshrl.u32 %v2176_v61, 16 }
  0x40   : > { %v678_v22 = vshll.u32 %v2188_v3, 16  ;;  %v483_v9 = vpack.c.bf16 %v458_v5, %v458_v5  ;;  %v749_v33 = vrot.slane %v2188_v3, 3  ;;  %v629_v53 = vrot.slane %v627_v12, 2 }
  0x41   : > { %894 = vrot.lane.b32.xlu1 %v2049_v31, %s1902_s21  ;;  %v635_v31 = vshll.u32 %v2176_v61, 16  ;;  %v677_v24 = vrot.slane %v675_v18, 1  ;;  %v683_v25 = vshrl.u32 %v485_v17, 16  ;;  %v686_v27 = vshll.u32 %v485_v17, 16 }
  0x42   : > { %892 = vrot.lane.b32.xlu0 %v724_v59, %s1902_s21  ;;  %v658_v28 = vshrl.u32 %v2200_v14, 16  ;;  %v680_v30 = vrot.slane %v678_v22, 2  ;;  %v661_v23 = vshll.u32 %v2200_v14, 16  ;;  %v666_v32 = vshrl.u32 %v483_v9, 16  ;;  %v752_v59 = vld [vmem:[%s2537_s2] sm:$0x3] }
  0x43   : > { %v685_v37 = vrot.slane %v683_v25, 1  ;;  %v688_v38 = vrot.slane %v686_v27, 2  ;;  %v669_v42 = vshll.u32 %v483_v9, 16  ;;  %v750_v47 = vrot.slane %v485_v17, 3  ;;  %1734 = vmatprep.subr.msk.bf16.mxu0 %vm779_vm3, %v752_v59 }
  0x44   : > { %v660_v40 = vrot.slane %v658_v28, 1  ;;  %v681_v43 = vor.u32 %v680_v30, %v677_v24  ;;  %v663_v45 = vrot.slane %v661_v23, 2  ;;  %v668_v46 = vrot.slane %v666_v32, 1 }
  0x45   : > { %906 = vrot.lane.b32.xlu1 %v2042_v26, %s1900_s19  ;;  %v689_v48 = vor.u32 %v688_v38, %v685_v37  ;;  %v671_v49 = vrot.slane %v669_v42, 2  ;;  %v746_v26 = vrot.slane %v2200_v14, 3  ;;  %v747_v50 = vrot.slane %v483_v9, 3 }
  0x46   : > { %904 = vrot.lane.b32.xlu0 %v2135_v15, %s1900_s19  ;;  %v634_v54 = vrot.slane %v632_v19, 1  ;;  %v664_v56 = vor.u32 %v663_v45, %v660_v40  ;;  %v751_v58 = vsel %vm715_vm0, %v749_v33, %v750_v47  ;;  %v637_v60 = vrot.slane %v635_v31, 2 }
  0x47   : > { %v690_v62 = vsel %vm486_vm1, %v681_v43, %v689_v48  ;;  %v672_v41 = vor.u32 %v671_v49, %v668_v46  ;;  %v748_v63 = vsel %vm715_vm0, %v746_v26, %v747_v50  ;;  %v781_v12 = vsel %vm779_vm3, %v752_v59, 0 }
  0x48   : > { %v1116_v17 = vsel %vm779_vm3, %v1793_v52, 0  ;;  %v647_v18 = vor.u32 %v2186_v2, %v2184_v1  ;;  %v655_v19 = vor.u32 %v654_v11, %v2197_v10  ;;  %v630_v31 = vor.u32 %v629_v53, %v626_v13  ;;  %1703 = vmatpush3.bf16.msra.mxu0 %v781_v12 }
  0x49   : > { %918 = vrot.lane.b32.xlu1 %v2129_v7, %s1905_s29  ;;  %v673_v5 = vsel %vm486_vm1, %v664_v56, %v672_v41  ;;  %v638_v22 = vor.u32 %v637_v60, %v634_v54  ;;  %1721 = vmatpush3.bf16.msra.mxu1 %v1116_v17  ;;  %v740_v24 = vrot.slane %v2160_v44, 3  ;;  %v741_v1 = vrot.slane %v2176_v61, 3 }
  0x4a   : > { %916 = vrot.lane.b32.xlu0 %v2195_v6, %s1905_s29  ;;  %v743_v10 = vrot.slane %v2149_v34, 3  ;;  %v744_v11 = vrot.slane %v2157_v39, 3 }
  0x4b   : > { %v639_v9 = vsel %vm486_vm1, %v630_v31, %v638_v22  ;;  %1705 = vmatmul.mubr.msk.bf16.vlgmr.msra.gmra.mrb[0].mxu0 %vm760_vm2, %v2096_v35  ;;  %v742_v2 = vsel %vm715_vm0, %v740_v24, %v741_v1 }
  0x4c   : > { %1708 = vmatprep.mubr.msk.bf16.mxu0 %vm760_vm2, %v2195_v6  ;;  %v745_v61 = vsel %vm715_vm0, %v743_v10, %v744_v11 }
  0x4d   : > { %930 = vrot.lane.b32.xlu1 %v2140_v21, %s1903_s22  ;;  %v656_v21 = vsel %vm486_vm1, %v647_v18, %v655_v19 }
  0x4e   : > { %928 = vrot.lane.b32.xlu0 %v2182_v0, %s1903_s22 }
  0x51   : > { %942 = vrot.lane.b32.xlu1 %v2149_v34, %s1901_s20 }
  0x52   : > { %940 = vrot.lane.b32.xlu0 %v2160_v44, %s1901_s20 }
  0x53   : > { %1709 = vmatmul.mubr.msk.bf16.gmra.mrb[4].mxu0 %vm760_vm2, %v2129_v7 }
  0x54   : > { %1712 = vmatprep.mubr.msk.bf16.mxu0 %vm760_vm2, %v2117_v57 }
  0x55   : > { %954 = vrot.lane.b32.xlu1 %v656_v21, %s1906_s30 }
  0x56   : > { %952 = vrot.lane.b32.xlu0 %v639_v9, %s1906_s30 }
  0x59   : > { %884 = vrot.lane.b32.xlu1 %v2096_v35, %s1904_s27 }
  0x5a   : > { %964 = vrot.lane.b32.xlu0 %v742_v2, %s1907_s10 }
  0x5b   : > { %1713 = vmatmul.mubr.msk.bf16.gmra.mrb[8].mxu0 %vm760_vm2, %v639_v9 }
  0x5d   : > { %886 = vrot.lane.b32.xlu1 %v2195_v6, %s1904_s27 }
  0x5e   : > { %966 = vrot.lane.b32.xlu0 %v745_v61, %s1907_s10 }
  0x61   : > { %898 = vrot.lane.b32.xlu1 %v2182_v0, %s1902_s21 }
  0x62   : > { %896 = vrot.lane.b32.xlu0 %v2066_v55, %s1902_s21 }
  0x65   : > { %910 = vrot.lane.b32.xlu1 %v2160_v44, %s1900_s19 }
  0x66   : > { %908 = vrot.lane.b32.xlu0 %v2035_v20, %s1900_s19 }
  0x69   : > { %922 = vrot.lane.b32.xlu1 %v639_v9, %s1905_s29 }
  0x6a   : > { %920 = vrot.lane.b32.xlu0 %v2117_v57, %s1905_s29 }
  0x6d   : > { %934 = vrot.lane.b32.xlu1 %v742_v2, %s1903_s22 }
  0x6e   : > { %932 = vrot.lane.b32.xlu0 %v2155_v36, %s1903_s22 }
  0x71   : > { %946 = vrot.lane.b32.xlu1 %v2188_v3, %s1901_s20 }
  0x72   : > { %944 = vrot.lane.b32.xlu0 %v2200_v14, %s1901_s20 }
  0x75   : > { %958 = vrot.lane.b32.xlu1 %v690_v62, %s1906_s30 }
  0x76   : > { %956 = vrot.lane.b32.xlu0 %v673_v5, %s1906_s30 }
  0x79   : > { %970 = vrot.lane.b32.xlu1 %v751_v58, %s1907_s10 }
  0x7a   : > { %968 = vrot.lane.b32.xlu0 %v748_v63, %s1907_s10  ;;  %s1739_s10 = smul.u32 36, %s2556_s12 }
  0x7c   : > { %s421_s23 = sadd.s32 %s1739_s10, %s1650_s11 }
  0x7d   : > { %s1651_s24 = sshll.u32 %s421_s23, 3 }
  0x7e   : > { %s2458_s20 = scalar_lea.vmem %s2544_s9, %s1651_s24 }
  0x8e   : > { %v903_v20 = vpop.permute.xlu1 %902 }
  0x8f   : > { %v901_v55 = vpop.permute.xlu0 %900 }
  0x92   : > { %v939_v35 = vpop.permute.xlu1 %938 }
  0x93   : > { %v937_v57 = vpop.permute.xlu0 %936 }
  0x96   : > { %v889_v7 = vpop.permute.xlu1 %888 }
  0x97   : > { %v925_v34 = vpop.permute.xlu0 %924 }
  0x9a   : > { %v891_v36 = vpop.permute.xlu1 %890 }
  0x9b   : > { %v877_v39 = vpop.permute.xlu0 %876 }
  0x9c   : > { %v973_v44 = vsel %vm760_vm2, %v2029_v16, %v877_v39 }
  0x9d   : > { %v986_v6 = vsel %vm984_vm4, %v973_v44, %v889_v7 }
  0x9e   : > { %v927_v0 = vpop.permute.xlu1 %926  ;;  %v999_v27 = vsel %vm997_vm5, %v986_v6, %v901_v55 }
  0x9f   : > { %v879_v3 = vpop.permute.xlu0 %878 }
  0xa0   : > { %v975_v13 = vsel %vm760_vm2, %v2045_v29, %v879_v3 }
  0xa1   : > { %v988_v14 = vsel %vm984_vm4, %v975_v13, %v891_v36 }
  0xa2   : > { %v915_v25 = vpop.permute.xlu1 %914  ;;  %v1001_v30 = vsel %vm997_vm5, %v988_v14, %v903_v20 }
  0xa3   : > { %v913_v28 = vpop.permute.xlu0 %912  ;;  %v1014_v33 = vsel %vm1010_vm6, %v1001_v30, %v915_v25 }
  0xa4   : > { %v1012_v16 = vsel %vm1010_vm6, %v999_v27, %v913_v28  ;;  %v1027_v38 = vsel %vm1023_vm7, %v1014_v33, %v927_v0 }
  0xa5   : > { %v1025_v23 = vsel %vm1023_vm7, %v1012_v16, %v925_v34  ;;  %v1040_v45 = vsel %vm1036_vm8, %v1027_v38, %v939_v35 }
  0xa6   : > { %v951_v32 = vpop.permute.xlu1 %950  ;;  %v1038_v37 = vsel %vm1036_vm8, %v1025_v23, %v937_v57 }
  0xa7   : > { %v1053_v47 = vsel %vm1049_vm9, %v1040_v45, %v951_v32 }
  0xa8   : > { %v949_v29 = vpop.permute.xlu0 %948 }
  0xa9   : > { %v1051_v40 = vsel %vm1049_vm9, %v1038_v37, %v949_v29 }
  0xab   : > { %v881_v42 = vpop.permute.xlu1 %880 }
  0xac   : > { %v961_v43 = vpop.permute.xlu0 %960  ;;  %v977_v63 = vsel %vm760_vm2, %v2109_v51, %v881_v42 }
  0xad   : > { %v1064_v46 = vsel %vm1062_vm10, %v1051_v40, %v961_v43 }
  0xae   : > { %1722 = vmatprep.mubr.msk.bf16.mxu1 %vm1102_vm11, %v1064_v46 }
  0xaf   : > { %v883_v48 = vpop.permute.xlu1 %882 }
  0xb0   : > { %v963_v49 = vpop.permute.xlu0 %962  ;;  %v979_v31 = vsel %vm760_vm2, %v2012_v8, %v883_v48 }
  0xb1   : > { %v1066_v26 = vsel %vm1062_vm10, %v1053_v47, %v963_v49 }
  0xb2   : > { %1723 = vmatmul.mubr.msk.bf16.vlgmr.msra.gmra.mrb[0].mxu1 %vm1102_vm11, %v1066_v26 }
  0xb3   : > { %v895_v50 = vpop.permute.xlu1 %894 }
  0xb4   : > { %v893_v52 = vpop.permute.xlu0 %892  ;;  %v992_v21 = vsel %vm984_vm4, %v979_v31, %v895_v50 }
  0xb5   : > { %v990_v5 = vsel %vm984_vm4, %v977_v63, %v893_v52 }
  0xb7   : > { %v907_v53 = vpop.permute.xlu1 %906 }
  0xb8   : > { %v905_v54 = vpop.permute.xlu0 %904  ;;  %v1005_v24 = vsel %vm997_vm5, %v992_v21, %v907_v53 }
  0xb9   : > { %v1003_v12 = vsel %vm997_vm5, %v990_v5, %v905_v54 }
  0xbb   : > { %v919_v56 = vpop.permute.xlu1 %918 }
  0xbc   : > { %v917_v58 = vpop.permute.xlu0 %916  ;;  %v1018_v10 = vsel %vm1010_vm6, %v1005_v24, %v919_v56 }
  0xbd   : > { %v1016_v19 = vsel %vm1010_vm6, %v1003_v12, %v917_v58 }
  0xbf   : > { %v931_v59 = vpop.permute.xlu1 %930 }
  0xc0   : > { %v929_v60 = vpop.permute.xlu0 %928  ;;  %v1031_v61 = vsel %vm1023_vm7, %v1018_v10, %v931_v59  ;;  %v2349_v59 = vld [vmem:[%s2538_s3] ss:$0 sm:$0xff] }
  0xc1   : > { %v1029_v22 = vsel %vm1023_vm7, %v1016_v19, %v929_v60  ;;  %v2376_v10 = vld [vmem:[%s2540_s5] ss:$0 sm:$0xff] }
  0xc3   : > { %v943_v62 = vpop.permute.xlu1 %942 }
  0xc4   : > { %v941_v41 = vpop.permute.xlu0 %940  ;;  %v1044_v8 = vsel %vm1036_vm8, %v1031_v61, %v943_v62 }
  0xc5   : > { %v1042_v9 = vsel %vm1036_vm8, %v1029_v22, %v941_v41 }
  0xc7   : > { %v955_v17 = vpop.permute.xlu1 %954 }
  0xc8   : > { %v953_v18 = vpop.permute.xlu0 %952  ;;  %v1057_v20 = vsel %vm1049_vm9, %v1044_v8, %v955_v17 }
  0xc9   : > { %v1055_v51 = vsel %vm1049_vm9, %v1042_v9, %v953_v18  ;;  %v2358_v18 = vld [vmem:[%s2541_s6] ss:$0 sm:$0xff] }
  0xcb   : > { %v885_v1 = vpop.permute.xlu1 %884 }
  0xcc   : > { %v965_v2 = vpop.permute.xlu0 %964  ;;  %v981_v36 = vsel %vm760_vm2, %v2007_v4, %v885_v1 }
  0xcd   : > { %v1068_v11 = vsel %vm1062_vm10, %v1055_v51, %v965_v2 }
  0xce   : > { %1726 = vmatprep.mubr.msk.bf16.mxu1 %vm1102_vm11, %v1068_v11 }
  0xcf   : > { %v887_v55 = vpop.permute.xlu1 %886 }
  0xd0   : > { %v967_v35 = vpop.permute.xlu0 %966  ;;  %v983_v39 = vsel %vm760_vm2, %v2135_v15, %v887_v55 }
  0xd1   : > { %v1070_v57 = vsel %vm1062_vm10, %v1057_v20, %v967_v35 }
  0xd2   : > { %1727 = vmatmul.mubr.msk.bf16.gmra.mrb[4].mxu1 %vm1102_vm11, %v1070_v57 }
  0xd3   : > { %v899_v7 = vpop.permute.xlu1 %898 }
  0xd4   : > { %v897_v34 = vpop.permute.xlu0 %896  ;;  %v996_v44 = vsel %vm984_vm4, %v983_v39, %v899_v7  ;;  %v2383_v7 = vld [vmem:[%s2542_s7] ss:$0 sm:$0xff] }
  0xd5   : > { %v994_v0 = vsel %vm984_vm4, %v981_v36, %v897_v34 }
  0xd7   : > { %v911_v3 = vpop.permute.xlu1 %910 }
  0xd8   : > { %v909_v6 = vpop.permute.xlu0 %908  ;;  %v1009_v13 = vsel %vm997_vm5, %v996_v44, %v911_v3 }
  0xd9   : > { %v1007_v14 = vsel %vm997_vm5, %v994_v0, %v909_v6 }
  0xdb   : > { %v923_v25 = vpop.permute.xlu1 %922 }
  0xdc   : > { %v921_v27 = vpop.permute.xlu0 %920  ;;  %v1022_v28 = vsel %vm1010_vm6, %v1009_v13, %v923_v25 }
  0xdd   : > { %v1020_v30 = vsel %vm1010_vm6, %v1007_v14, %v921_v27 }
  0xdf   : > { %v935_v4 = vpop.permute.xlu1 %934 }
  0xe0   : > { %v933_v16 = vpop.permute.xlu0 %932  ;;  %v1035_v15 = vsel %vm1023_vm7, %v1022_v28, %v935_v4 }
  0xe1   : > { %v1033_v23 = vsel %vm1023_vm7, %v1020_v30, %v933_v16 }
  0xe3   : > { %v947_v32 = vpop.permute.xlu1 %946 }
  0xe4   : > { %v945_v33 = vpop.permute.xlu0 %944  ;;  %v1048_v29 = vsel %vm1036_vm8, %v1035_v15, %v947_v32 }
  0xe5   : > { %v1046_v37 = vsel %vm1036_vm8, %v1033_v23, %v945_v33 }
  0xe7   : > { %v959_v38 = vpop.permute.xlu1 %958 }
  0xe8   : > { %v957_v40 = vpop.permute.xlu0 %956  ;;  %v1061_v42 = vsel %vm1049_vm9, %v1048_v29, %v959_v38 }
  0xe9   : > { %v1059_v43 = vsel %vm1049_vm9, %v1046_v37, %v957_v40 }
  0xeb   : > { %v971_v45 = vpop.permute.xlu1 %970 }
  0xec   : > { %v969_v46 = vpop.permute.xlu0 %968  ;;  %v1074_v47 = vsel %vm1062_vm10, %v1061_v42, %v971_v45 }
  0xed   : > { %v1072_v48 = vsel %vm1062_vm10, %v1059_v43, %v969_v46 }
  0xee   : > { %1730 = vmatprep.mubr.msk.bf16.mxu1 %vm1102_vm11, %v1072_v48 }
  0xef   : > { %1731 = vmatmul.mubr.msk.bf16.gmra.mrb[8].mxu1 %vm1102_vm11, %v1074_v47 }
 0x11e   : > { %v1706_v49 = vpop.f32.mrb[0].mxu0 }
 0x11f   : > { %v817_v26 = vpop.f32.mrb[1].mxu0  ;;  %v826_v51 = vadd.f32 %v1706_v49, %v2349_v59 }
 0x120   : > { %v1707_v50 = vpop.f32.mrb[2].mxu0  ;;  %v818_v1 = vadd.f32 %v2349_v59, %v817_v26 }
 0x121   : > { %v820_v52 = vpop.f32.mrb[3].mxu0  ;;  %v829_v2 = vadd.f32 %v1707_v50, %v2349_v59  ;;  %v866_v61 = vmax.f32 %v826_v51, 0.0 }
 0x122   : > { %v821_v11 = vadd.f32 %v2349_v59, %v820_v52  ;;  %v864_v20 = vmax.f32 %v818_v1, 0.0 }
 0x123   : > { %v867_v57 = vmax.f32 %v829_v2, 0.0  ;;  %v1220_v44 = vmul.f32 %v2358_v18, %v866_v61 }
 0x124   : > { %v865_v39 = vmax.f32 %v821_v11, 0.0  ;;  %v1218_v13 = vmul.f32 %v2358_v18, %v864_v20 }
 0x125   : > { %v1221_v28 = vmul.f32 %v2358_v18, %v867_v57 }
 0x126   : > { %v1710_v53 = vpop.f32.mrb[4].mxu0  ;;  %v1219_v16 = vmul.f32 %v2358_v18, %v865_v39 }
 0x127   : > { %v833_v54 = vpop.f32.mrb[5].mxu0  ;;  %v842_v46 = vadd.f32 %v1710_v53, %v2349_v59 }
 0x128   : > { %v1711_v56 = vpop.f32.mrb[6].mxu0  ;;  %v834_v47 = vadd.f32 %v2349_v59, %v833_v54 }
 0x129   : > { %v836_v58 = vpop.f32.mrb[7].mxu0  ;;  %v845_v48 = vadd.f32 %v1711_v56, %v2349_v59  ;;  %v870_v26 = vmax.f32 %v842_v46, 0.0 }
 0x12a   : > { %v837_v49 = vadd.f32 %v2349_v59, %v836_v58  ;;  %v868_v52 = vmax.f32 %v834_v47, 0.0 }
 0x12c   : > { %v1222_v56 = vmul.f32 %v2358_v18, %v868_v52 }
 0x12e   : > { %v1714_v60 = vpop.f32.mrb[8].mxu0 }
 0x12f   : > { %v858_v62 = vadd.f32 %v1714_v60, %v2349_v59  ;;  %v2352_v41 = vpop.f32.mrb[9].mxu0 }
 0x130   : > { %v1715_v63 = vpop.f32.mrb[10].mxu0 }
 0x131   : > { %v874_v5 = vmax.f32 %v858_v62, 0.0  ;;  %v861_v12 = vadd.f32 %v1715_v63, %v2349_v59  ;;  %v852_v17 = vpop.f32.mrb[11].mxu0  ;;  %v871_v63 = vmax.f32 %v845_v48, 0.0 }
 0x132   : > { %v853_v19 = vadd.f32 %v2349_v59, %v852_v17  ;;  %v869_v17 = vmax.f32 %v837_v49, 0.0 }
 0x133   : > { %v2362_v31 = vmul.f32 %v2358_v18, %v874_v5  ;;  %v875_v22 = vmax.f32 %v861_v12, 0.0  ;;  %v1225_v1 = vmul.f32 %v2358_v18, %v871_v63 }
 0x134   : > { %v873_v21 = vmax.f32 %v853_v19, 0.0  ;;  %v1224_v19 = vmul.f32 %v2358_v18, %v870_v26  ;;  %v1223_v61 = vmul.f32 %v2358_v18, %v869_v17 }
 0x135   : > { %v2365_v9 = vmul.f32 %v2358_v18, %v875_v22 }
 0x136   : > { %v2368_v24 = vmul.f32 %v2358_v18, %v873_v21 }
 0x185   : > { %v1724_v8 = vpop.f32.mrb[0].mxu1 }
 0x186   : > { %v1161_v55 = vadd.f32 %v1724_v8, %v2376_v10  ;;  %v1152_v35 = vpop.f32.mrb[1].mxu1 }
 0x187   : > { %v1153_v34 = vadd.f32 %v2376_v10, %v1152_v35  ;;  %v1725_v36 = vpop.f32.mrb[2].mxu1 }
 0x188   : > { %v1201_v0 = vmax.f32 %v1161_v55, 0.0  ;;  %v1164_v3 = vadd.f32 %v1725_v36, %v2376_v10  ;;  %v1155_v6 = vpop.f32.mrb[3].mxu1 }
 0x189   : > { %v1199_v14 = vmax.f32 %v1153_v34, 0.0  ;;  %v1156_v25 = vadd.f32 %v2376_v10, %v1155_v6  ;;  %v1908_v6 = vmov 0  }
 0x18a   : > { %v1239_v27 = vmul.f32 %v2383_v7, %v1201_v0  ;;  %v1202_v30 = vmax.f32 %v1164_v3, 0.0  ;;  %1789 = vset.pattern.permute.xlu1 %v1908_v6  ;;  %1790 = vset.pattern.permute.xlu0 %v1908_v6 }
 0x18b   : > { %v1237_v4 = vmul.f32 %v2383_v7, %v1199_v14  ;;  %v1200_v15 = vmax.f32 %v1156_v25, 0.0 }
 0x18c   : > { %v1240_v23 = vmul.f32 %v2383_v7, %v1202_v30  ;;  %v1251_v32 = vadd.f32 %v1239_v27, %v1220_v44 }
 0x18d   : > { %v1238_v33 = vmul.f32 %v2383_v7, %v1200_v15  ;;  %v1249_v29 = vadd.f32 %v1237_v4, %v1218_v13  ;;  %v850_v13 = vadd.f32 %v2349_v59, %v2352_v41 }
 0x18e   : > { %v1267_v37 = vsel %vm1010_vm6, %v1251_v32, 0.0  ;;  %v1252_v38 = vadd.f32 %v1240_v23, %v1221_v28 }
 0x18f   : > { %1268 = vadd.xlane.f32.xlu0 %v1267_v37  ;;  %v1250_v40 = vadd.f32 %v1238_v33, %v1219_v16  ;;  %v1261_v43 = vsel %vm1010_vm6, %v1249_v29, 0.0  ;;  %v872_v14 = vmax.f32 %v850_v13, 0.0 }
 0x190   : > { %v1270_v45 = vsel %vm1010_vm6, %v1252_v38, 0.0 }
 0x191   : > { %v1264_v42 = vsel %vm1010_vm6, %v1250_v40, 0.0  ;;  %v1226_v32 = vmul.f32 %v2358_v18, %v872_v14 }
 0x192   : > { %1265 = vadd.xlane.f32.xlu1 %v1264_v42 }
 0x193   : > { %1262 = vadd.xlane.f32.xlu0 %v1261_v43 }
 0x197   : > { %1271 = vadd.xlane.f32.xlu0 %v1270_v45 }
 0x1a5   : > { %v1728_v50 = vpop.f32.mrb[4].mxu1 }
 0x1a6   : > { %v1177_v60 = vadd.f32 %v1728_v50, %v2376_v10  ;;  %v1168_v62 = vpop.f32.mrb[5].mxu1 }
 0x1a7   : > { %v1169_v5 = vadd.f32 %v2376_v10, %v1168_v62  ;;  %v1729_v12 = vpop.f32.mrb[6].mxu1 }
 0x1a8   : > { %v1205_v53 = vmax.f32 %v1177_v60, 0.0  ;;  %v1180_v54 = vadd.f32 %v1729_v12, %v2376_v10  ;;  %v1171_v22 = vpop.f32.mrb[7].mxu1 }
 0x1a9   : > { %v1203_v58 = vmax.f32 %v1169_v5, 0.0  ;;  %v1172_v21 = vadd.f32 %v2376_v10, %v1171_v22 }
 0x1aa   : > { %v1243_v51 = vmul.f32 %v2383_v7, %v1205_v53  ;;  %v1206_v2 = vmax.f32 %v1180_v54, 0.0 }
 0x1ab   : > { %v1241_v11 = vmul.f32 %v2383_v7, %v1203_v58  ;;  %v1204_v8 = vmax.f32 %v1172_v21, 0.0 }
 0x1ac   : > { %v1244_v20 = vmul.f32 %v2383_v7, %v1206_v2  ;;  %v1255_v55 = vadd.f32 %v1243_v51, %v1224_v19 }
 0x1ad   : > { %v1242_v35 = vmul.f32 %v2383_v7, %v1204_v8  ;;  %v1253_v57 = vadd.f32 %v1241_v11, %v1222_v56 }
 0x1ae   : > { %v1279_v34 = vsel %vm1010_vm6, %v1255_v55, 0.0  ;;  %v1256_v36 = vadd.f32 %v1244_v20, %v1225_v1 }
 0x1af   : > { %1280 = vadd.xlane.f32.xlu1 %v1279_v34  ;;  %v1254_v39 = vadd.f32 %v1242_v35, %v1223_v61  ;;  %v1273_v0 = vsel %vm1010_vm6, %v1253_v57, 0.0 }
 0x1b0   : > { %v1282_v44 = vsel %vm1010_vm6, %v1256_v36, 0.0 }
 0x1b1   : > { %1283 = vadd.xlane.f32.xlu0 %v1282_v44  ;;  %v1276_v3 = vsel %vm1010_vm6, %v1254_v39, 0.0 }
 0x1b3   : > { %1274 = vadd.xlane.f32.xlu1 %v1273_v0 }
 0x1b5   : > { %1277 = vadd.xlane.f32.xlu0 %v1276_v3 }
 0x1c2   : > { %v1732_v25 = vpop.f32.mrb[8].mxu1 }
 0x1c3   : > { %v1193_v27 = vadd.f32 %v1732_v25, %v2376_v10  ;;  %v1184_v28 = vpop.f32.mrb[9].mxu1 }
 0x1c4   : > { %v1185_v30 = vadd.f32 %v2376_v10, %v1184_v28  ;;  %v1733_v4 = vpop.f32.mrb[10].mxu1 }
 0x1c5   : > { %v1209_v16 = vmax.f32 %v1193_v27, 0.0  ;;  %v1196_v15 = vadd.f32 %v1733_v4, %v2376_v10  ;;  %v1187_v23 = vpop.f32.mrb[11].mxu1 }
 0x1c6   : > { %v1207_v33 = vmax.f32 %v1185_v30, 0.0  ;;  %v1188_v29 = vadd.f32 %v2376_v10, %v1187_v23 }
 0x1c7   : > { %v1247_v37 = vmul.f32 %v2383_v7, %v1209_v16  ;;  %v1210_v59 = vmax.f32 %v1196_v15, 0.0 }
 0x1c8   : > { %v1245_v41 = vmul.f32 %v2383_v7, %v1207_v33  ;;  %v1208_v38 = vmax.f32 %v1188_v29, 0.0 }
 0x1c9   : > { %v1248_v40 = vmul.f32 %v2383_v7, %v1210_v59  ;;  %v1259_v42 = vadd.f32 %v1247_v37, %v2362_v31  ;;  %v2438_v31 = vld [vmem:[#allocation2] ss:$0 sm:$0xff] }
 0x1ca   : > { %v1246_v43 = vmul.f32 %v2383_v7, %v1208_v38  ;;  %v1257_v45 = vadd.f32 %v1245_v41, %v1226_v32 }
 0x1cb   : > { %v1260_v46 = vadd.f32 %v1248_v40, %v2365_v9  ;;  %v1291_v48 = vsel %vm1010_vm6, %v1259_v42, 0.0 }
 0x1cc   : > { %v1285_v18 = vsel %vm1010_vm6, %v1257_v45, 0.0  ;;  %v1258_v47 = vadd.f32 %v1246_v43, %v2368_v24 }
 0x1cd   : > { %1286 = vadd.xlane.f32.xlu1 %v1285_v18  ;;  %v1294_v49 = vsel %vm1010_vm6, %v1260_v46, 0.0 }
 0x1ce   : > { %v1288_v10 = vsel %vm1010_vm6, %v1258_v47, 0.0 }
 0x1cf   : > { %1289 = vadd.xlane.f32.xlu0 %v1288_v10 }
 0x1d1   : > { %1292 = vadd.xlane.f32.xlu1 %v1291_v48 }
 0x1d3   : > { %1295 = vadd.xlane.f32.xlu0 %v1294_v49 }
 0x21c   : > { %v1269_v7 = vpop.xlane.xlu0 %1268 }
 0x21d   : > { %v1306_v26 = vadd.f32 %v2438_v31, %v1269_v7 }
 0x21f   : > { %v1674_v9 = vmul.f32 -1.442695, %v1306_v26  ;;  %v1266_v50 = vpop.xlane.xlu1 %1265 }
 0x220   : > { %v1305_v52 = vadd.f32 %v2438_v31, %v1266_v50  ;;  %v1263_v24 = vpop.xlane.xlu0 %1262 }
 0x221   : > { %1794 = vpow2.f32 %v1674_v9  ;;  %v1304_v60 = vadd.f32 %v2438_v31, %v1263_v24 }
 0x222   : > { %v1673_v62 = vmul.f32 -1.442695, %v1305_v52 }
 0x223   : > { %v1672_v63 = vmul.f32 -1.442695, %v1304_v60 }
 0x224   : > { %1796 = vpow2.f32 %v1673_v62  ;;  %v1272_v5 = vpop.xlane.xlu0 %1271 }
 0x225   : > { %1798 = vpow2.f32 %v1672_v63  ;;  %v1307_v12 = vadd.f32 %v2438_v31, %v1272_v5 }
 0x227   : > { %v1675_v17 = vmul.f32 -1.442695, %v1307_v12 }
 0x229   : > { %1800 = vpow2.f32 %v1675_v17 }
 0x22b   : > { %v1795_v19 = vpop.eup %1794 }
 0x22c   : > { %v1354_v53 = vadd.f32 1.0, %v1795_v19 }
 0x22e   : > { %v1797_v54 = vpop.eup %1796  ;;  %1802 = vrcp.f32 %v1354_v53 }
 0x22f   : > { %v1799_v22 = vpop.eup %1798  ;;  %v1353_v56 = vadd.f32 1.0, %v1797_v54 }
 0x230   : > { %v1352_v58 = vadd.f32 1.0, %v1799_v22 }
 0x231   : > { %1804 = vrcp.f32 %v1353_v56 }
 0x232   : > { %1806 = vrcp.f32 %v1352_v58 }
 0x233   : > { %v1801_v21 = vpop.eup %1800 }
 0x234   : > { %v1355_v51 = vadd.f32 1.0, %v1801_v21 }
 0x236   : > { %1808 = vrcp.f32 %v1355_v51 }
 0x238   : > { %v1803_v1 = vpop.eup %1802 }
 0x239   : > { %v1390_v2 = vadd.f32 1.0, %v1803_v1 }
 0x23b   : > { %v1805_v11 = vpop.eup %1804  ;;  %1410 = vperm.xlu1 %1789, %v1390_v2  }
 0x23c   : > { %v1807_v61 = vpop.eup %1806  ;;  %v1281_v8 = vpop.xlane.xlu1 %1280  ;;  %v1389_v20 = vadd.f32 1.0, %v1805_v11  ;;  %v1842_v11 = vld [vmem:[%s2002_s28 + $0x60] sm:$0xff] }
 0x23d   : > { %v1310_v55 = vadd.f32 %v2438_v31, %v1281_v8  ;;  %v1388_v35 = vadd.f32 1.0, %v1807_v61 }
 0x23e   : > { %1406 = vperm.xlu0 %1790, %v1389_v20   ;;  %v1284_v57 = vpop.xlane.xlu0 %1283 }
 0x23f   : > { %v1678_v34 = vmul.f32 -1.442695, %v1310_v55  ;;  %v1311_v36 = vadd.f32 %v2438_v31, %v1284_v57  ;;  %1402 = vperm.xlu1 %1789, %v1388_v35   ;;  %v1843_v57 = vld [vmem:[%s2002_s28 + $0x58] sm:$0x3f] }
 0x240   : > { %v1809_v39 = vpop.eup %1808  ;;  %v1275_v44 = vpop.xlane.xlu1 %1274 }
 0x241   : > { %1810 = vpow2.f32 %v1678_v34  ;;  %v1679_v0 = vmul.f32 -1.442695, %v1311_v36  ;;  %v1308_v3 = vadd.f32 %v2438_v31, %v1275_v44  ;;  %v1391_v6 = vadd.f32 1.0, %v1809_v39  ;;  %v1844_v39 = vld [vmem:[%s2002_s28 + $0x48] sm:$0xff] }
 0x242   : > { %v1278_v13 = vpop.xlane.xlu0 %1277 }
 0x243   : > { %1812 = vpow2.f32 %v1679_v0  ;;  %v1676_v14 = vmul.f32 -1.442695, %v1308_v3  ;;  %v1309_v25 = vadd.f32 %v2438_v31, %v1278_v13  ;;  %1414 = vperm.xlu1 %1789, %v1391_v6   ;;  %v1845_v0 = vld [vmem:[%s2002_s28 + $0x50] sm:$0xff] }
 0x245   : > { %1814 = vpow2.f32 %v1676_v14  ;;  %v1677_v27 = vmul.f32 -1.442695, %v1309_v25  ;;  %v1846_v25 = vld [vmem:[%s2002_s28 + $0x70] sm:$0x3f] }
 0x247   : > { %1816 = vpow2.f32 %v1677_v27 }
 0x24b   : > { %v1811_v28 = vpop.eup %1810 }
 0x24c   : > { %v1358_v30 = vadd.f32 1.0, %v1811_v28  ;;  %v1847_v28 = vld [vmem:[%s2002_s28 + $0x68] sm:$0xff] }
 0x24d   : > { %v1813_v4 = vpop.eup %1812 }
 0x24e   : > { %1818 = vrcp.f32 %v1358_v30  ;;  %v1359_v15 = vadd.f32 1.0, %v1813_v4 }
 0x24f   : > { %v1815_v16 = vpop.eup %1814 }
 0x250   : > { %v1356_v23 = vadd.f32 1.0, %v1815_v16 }
 0x251   : > { %v1817_v32 = vpop.eup %1816 }
 0x252   : > { %1820 = vrcp.f32 %v1356_v23  ;;  %v1357_v33 = vadd.f32 1.0, %v1817_v32 }
 0x253   : > { %1822 = vrcp.f32 %v1359_v15  ;;  %v1848_v15 = vld [vmem:[%s2017_s18] sm:$0xff] }
 0x254   : > { %1824 = vrcp.f32 %v1357_v33 }
 0x258   : > { %v1819_v29 = vpop.eup %1818 }
 0x259   : > { %v1394_v37 = vadd.f32 1.0, %v1819_v29  ;;  %v1849_v29 = vld [vmem:[%s2002_s28 + $0x78] sm:$0xff] }
 0x25a   : > { %v1287_v59 = vpop.xlane.xlu1 %1286 }
 0x25b   : > { %v1312_v41 = vadd.f32 %v2438_v31, %v1287_v59  ;;  %1426 = vperm.xlu1 %1789, %v1394_v37  }
 0x25c   : > { %v1821_v38 = vpop.eup %1820  ;;  %v1290_v40 = vpop.xlane.xlu0 %1289 }
 0x25d   : > { %v1680_v42 = vmul.f32 -1.442695, %v1312_v41  ;;  %v1313_v43 = vadd.f32 %v2438_v31, %v1290_v40  ;;  %v1392_v45 = vadd.f32 1.0, %v1821_v38  ;;  %v1823_v46 = vpop.eup %1822  ;;  %v1850_v40 = vld [vmem:[%s2017_s18 + $0x10] sm:$0x3f] }
 0x25e   : > { %v1293_v18 = vpop.xlane.xlu1 %1292  ;;  %v1395_v26 = vadd.f32 1.0, %v1823_v46  ;;  %v1825_v9 = vpop.eup %1824 }
 0x25f   : > { %1826 = vpow2.f32 %v1680_v42  ;;  %v1681_v47 = vmul.f32 -1.442695, %v1313_v43  ;;  %v1314_v10 = vadd.f32 %v2438_v31, %v1293_v18  ;;  %1418 = vperm.xlu1 %1789, %v1392_v45   ;;  %v1393_v52 = vadd.f32 1.0, %v1825_v9  ;;  %v1851_v43 = vld [vmem:[%s2017_s18 + $0x8] sm:$0xff] }
 0x260   : > { %v1296_v48 = vpop.xlane.xlu0 %1295 }
 0x261   : > { %1828 = vpow2.f32 %v1681_v47  ;;  %v1682_v49 = vmul.f32 -1.442695, %v1314_v10  ;;  %v1315_v7 = vadd.f32 %v2438_v31, %v1296_v48  ;;  %v1852_v10 = vld [vmem:[%s2002_s28 + $0x88] sm:$0x3f] }
 0x263   : > { %1830 = vpow2.f32 %v1682_v49  ;;  %v1683_v50 = vmul.f32 -1.442695, %v1315_v7  ;;  %1430 = vperm.xlu1 %1789, %v1395_v26   ;;  %v1853_v49 = vld [vmem:[%s2002_s28 + $0x80] sm:$0xff] }
 0x265   : > { %1832 = vpow2.f32 %v1683_v50  ;;  %v1854_v50 = vld [vmem:[%s2017_s18 + $0x18] sm:$0xff] }
 0x267   : > { %1422 = vperm.xlu1 %1789, %v1393_v52  }
 0x269   : > { %v1827_v24 = vpop.eup %1826 }
 0x26a   : > { %v1360_v60 = vadd.f32 1.0, %v1827_v24 }
 0x26b   : > { %v1829_v62 = vpop.eup %1828 }
 0x26c   : > { %1834 = vrcp.f32 %v1360_v60  ;;  %v1361_v63 = vadd.f32 1.0, %v1829_v62 }
 0x26d   : > { %v1831_v5 = vpop.eup %1830 }
 0x26e   : > { %1836 = vrcp.f32 %v1361_v63  ;;  %v1362_v12 = vadd.f32 1.0, %v1831_v5 }
 0x26f   : > { %v1833_v17 = vpop.eup %1832 }
 0x270   : > { %1838 = vrcp.f32 %v1362_v12  ;;  %v1363_v31 = vadd.f32 1.0, %v1833_v17  ;;  %v1855_v12 = vld [vmem:[%s2017_s18 + $0x28] sm:$0x3f] }
 0x272   : > { %1840 = vrcp.f32 %v1363_v31  ;;  %v1856_v31 = vld [vmem:[%s2017_s18 + $0x30] sm:$0xff] }
 0x276   : > { %v1835_v19 = vpop.eup %1834 }
 0x277   : > { %v1396_v53 = vadd.f32 1.0, %v1835_v19 }
 0x278   : > { %v1837_v54 = vpop.eup %1836 }
 0x279   : > { %1434 = vperm.xlu1 %1789, %v1396_v53   ;;  %v1397_v58 = vadd.f32 1.0, %v1837_v54  ;;  %v1857_v53 = vld [vmem:[%s2017_s18 + $0x20] sm:$0xff] }
 0x27a   : > { %v1839_v22 = vpop.eup %1838 }
 0x27b   : > { %v1398_v56 = vadd.f32 1.0, %v1839_v22 }
 0x27c   : > { %v1841_v21 = vpop.eup %1840 }
 0x27d   : > { %1442 = vperm.xlu0 %1790, %v1398_v56   ;;  %1438 = vperm.xlu1 %1789, %v1397_v58   ;;  %v1399_v51 = vadd.f32 1.0, %v1841_v21  ;;  %v1858_v21 = vld [vmem:[%s2017_s18 + $0x40] sm:$0x3f] }
 0x281   : > { %1446 = vperm.xlu1 %1789, %v1399_v51  }
 0x2ba   : > { %v1411_v1 = vpop.permute.xlu1 %1410 }
 0x2bb   : > { %v1452_v2 = vrot.slane %v1411_v1, 5  ;;  %v1859_v1 = vld [vmem:[%s2017_s18 + $0x38] sm:$0xff] }
 0x2bd   : > { %v1488_v61 = vmul.f32 %v1842_v11, %v1452_v2  ;;  %v1407_v8 = vpop.permute.xlu0 %1406 }
 0x2be   : > { %v1450_v20 = vrot.slane %v1407_v8, 5  ;;  %v1403_v55 = vpop.permute.xlu1 %1402 }
 0x2bf   : > { %1508 = vst.msk [vmem:[%s2458_s20 + $0xd] sm:$0xf8] %vm1503_vm12, %v1488_v61  ;;  %v1449_v35 = vrot.slane %v1403_v55, 5 }
 0x2c0   : > { %v1487_v34 = vmul.f32 %v1843_v57, %v1450_v20 }
 0x2c1   : > { %v1451_v36 = vsel %vm1448_vm13, %v1449_v35, %v1450_v20  ;;  %v1485_v44 = vmul.f32 %v1844_v39, %v1449_v35 }
 0x2c2   : > { %1507 = vst.msk [vmem:[%s2458_s20 + $0xd] sm:$0x7] %vm1506_vm14, %v1487_v34  ;;  %v1486_v3 = vmul.f32 %v1845_v0, %v1451_v36  ;;  %v1415_v6 = vpop.permute.xlu1 %1414 }
 0x2c3   : > { %1504 = vst.msk [vmem:[%s2458_s20 - $0x3] sm:$0xf8] %vm1503_vm12, %v1485_v44  ;;  %v1453_v13 = vrot.slane %v1415_v6, 5 }
 0x2c4   : > { %1505 = vst.msk [vmem:[%s2458_s20 + $0x5] sm:$0xff] %vm760_vm2, %v1486_v3 }
 0x2c5   : > { %v1454_v14 = vsel %vm1448_vm13, %v1452_v2, %v1453_v13  ;;  %v1490_v27 = vmul.f32 %v1846_v25, %v1453_v13 }
 0x2c6   : > { %v1489_v30 = vmul.f32 %v1847_v28, %v1454_v14 }
 0x2c7   : > { %1510 = vst.msk [vmem:[%s2458_s20 + $0x1d] sm:$0x7] %vm1506_vm14, %v1490_v27 }
 0x2c8   : > { %1509 = vst.msk [vmem:[%s2458_s20 + $0x15] sm:$0xff] %vm760_vm2, %v1489_v30 }
 0x2da   : > { %v1427_v4 = vpop.permute.xlu1 %1426 }
 0x2db   : > { %v1458_v16 = vrot.slane %v1427_v4, 5 }
 0x2dd   : > { %v1494_v23 = vmul.f32 %v1848_v15, %v1458_v16 }
 0x2de   : > { %v1419_v32 = vpop.permute.xlu1 %1418 }
 0x2df   : > { %1514 = vst.msk [vmem:[%s2458_s20 + $0x2d] sm:$0xf8] %vm1503_vm12, %v1494_v23  ;;  %v1455_v33 = vrot.slane %v1419_v32, 5 }
 0x2e1   : > { %v1491_v37 = vmul.f32 %v1849_v29, %v1455_v33 }
 0x2e2   : > { %v1431_v59 = vpop.permute.xlu1 %1430 }
 0x2e3   : > { %1511 = vst.msk [vmem:[%s2458_s20 + $0x1d] sm:$0xf8] %vm1503_vm12, %v1491_v37  ;;  %v1459_v41 = vrot.slane %v1431_v59, 5 }
 0x2e5   : > { %v1460_v38 = vsel %vm1448_vm13, %v1458_v16, %v1459_v41  ;;  %v1496_v42 = vmul.f32 %v1850_v40, %v1459_v41 }
 0x2e6   : > { %v1495_v45 = vmul.f32 %v1851_v43, %v1460_v38  ;;  %v1423_v46 = vpop.permute.xlu1 %1422 }
 0x2e7   : > { %1516 = vst.msk [vmem:[%s2458_s20 + $0x3d] sm:$0x7] %vm1506_vm14, %v1496_v42  ;;  %v1456_v18 = vrot.slane %v1423_v46, 5 }
 0x2e8   : > { %1515 = vst.msk [vmem:[%s2458_s20 + $0x35] sm:$0xff] %vm760_vm2, %v1495_v45 }
 0x2e9   : > { %v1457_v47 = vsel %vm1448_vm13, %v1455_v33, %v1456_v18  ;;  %v1493_v48 = vmul.f32 %v1852_v10, %v1456_v18 }
 0x2ea   : > { %v1492_v7 = vmul.f32 %v1853_v49, %v1457_v47 }
 0x2eb   : > { %1513 = vst.msk [vmem:[%s2458_s20 + $0x2d] sm:$0x7] %vm1506_vm14, %v1493_v48 }
 0x2ec   : > { %1512 = vst.msk [vmem:[%s2458_s20 + $0x25] sm:$0xff] %vm760_vm2, %v1492_v7 }
 0x2f8   : > { %v1435_v26 = vpop.permute.xlu1 %1434 }
 0x2f9   : > { %v1461_v9 = vrot.slane %v1435_v26, 5 }
 0x2fb   : > { %v1497_v52 = vmul.f32 %v1854_v50, %v1461_v9 }
 0x2fc   : > { %v1439_v24 = vpop.permute.xlu1 %1438  ;;  %v1443_v60 = vpop.permute.xlu0 %1442 }
 0x2fd   : > { %1517 = vst.msk [vmem:[%s2458_s20 + $0x3d] sm:$0xf8] %vm1503_vm12, %v1497_v52  ;;  %v1462_v62 = vrot.slane %v1439_v24, 5  ;;  %v1464_v63 = vrot.slane %v1443_v60, 5 }
 0x2ff   : > { %v1463_v5 = vsel %vm1448_vm13, %v1461_v9, %v1462_v62  ;;  %v1499_v17 = vmul.f32 %v1855_v12, %v1462_v62  ;;  %v1500_v19 = vmul.f32 %v1856_v31, %v1464_v63 }
 0x300   : > { %v1498_v54 = vmul.f32 %v1857_v53, %v1463_v5  ;;  %v1447_v22 = vpop.permute.xlu1 %1446 }
 0x301   : > { %1519 = vst.msk [vmem:[%s2458_s20 + $0x4d] sm:$0x7] %vm1506_vm14, %v1499_v17  ;;  %v1465_v56 = vrot.slane %v1447_v22, 5 }
 0x302   : > { %1520 = vst.msk [vmem:[%s2458_s20 + $0x4d] sm:$0xf8] %vm1503_vm12, %v1500_v19 }
 0x303   : > { %1518 = vst.msk [vmem:[%s2458_s20 + $0x45] sm:$0xff] %vm760_vm2, %v1498_v54  ;;  %v1466_v58 = vsel %vm1448_vm13, %v1464_v63, %v1465_v56  ;;  %v1502_v51 = vmul.f32 %v1858_v21, %v1465_v56 }
 0x304   : > { %v1501_v2 = vmul.f32 %v1859_v1, %v1466_v58 }
 0x305   : > { %1522 = vst.msk [vmem:[%s2458_s20 + $0x5d] sm:$0x7] %vm1506_vm14, %v1502_v51 }
 0x306   : > { %1521 = vst.msk [vmem:[%s2458_s20 + $0x55] sm:$0xff] %vm760_vm2, %v1501_v2 }
 0x307 PF: > { %s21_s15 = sadd.s32 1, %s1898_s15   ;;  %s2545_s11 = smov %s1890_s13 }
 0x308   : > { %p18_p9 = scmp.ge.s32.totalorder %s21_s15, 8   ;;  %s2546_s12 = smov %s1894_s14 }
 0x309   : > { %s2547_s13 = smov %s2550_s8  ;;  %s2548_s14 = smov %s2554_s16 }
 0x30a   :  { %20 = sbr.rel (!%p18_p9) target bundleno = 3 (0x3), region = 89 }

</bundles_post_ra>
